<compile_context>
chip_gen: v5e
topology: v5e:2x2
jax: 0.10.0
libtpu: 0.0.40
codegen_flags: <defaults>
</compile_context>

<pallas_src>
import jax
import jax.numpy as jnp
from jax import lax
from jax.experimental import pallas as pl
from jax.experimental.pallas import tpu as pltpu


def _default_vmem_limit_bytes():
    """Generation-aware VMEM cap: ~3/4 of physical, leaving headroom for
    Mosaic internal scratch (v7x: 64 MiB -> 48 MiB, v5e/v6e: 128 -> 96 MiB)."""
    try:
        phys = pltpu.get_tpu_info().vmem_capacity_bytes
    except Exception:
        phys = 64 * 1024 * 1024
    return max(32 * 1024 * 1024, min(int(phys) * 3 // 4, 96 * 1024 * 1024))


def _choose_tiles(B, C, N, T, L, in_itemsize, c_itemsize, budget):
    """Pick (batch_block, n_block) so the working set fits the VMEM budget."""

    def vmem_cost(bt, nt):
        x_blk = 2 * bt * C * nt * in_itemsize            # double-buffered X tile
        x_cast = bt * C * nt * c_itemsize if c_itemsize != in_itemsize else 0
        inter = 3 * bt * T * nt * 4                      # lg / p / a2 (f32)
        state = 4 * bt * T * C * 4                       # w_s, vt_prev, vt_acc (+tmp)
        wts = 2 * (T * C + max(L - 1, 1) * C * C) * in_itemsize
        out = 2 * bt * T * C * in_itemsize
        return x_blk + x_cast + inter + state + wts + out

    # N tile: full N if it fits, otherwise the largest multiple-of-128 divisor
    # of N that fits (lane dim of a block must be a multiple of 128 or full).
    n_cands = [N] + sorted((d for d in range(128, N, 128) if N % d == 0),
                           reverse=True)
    nt = n_cands[-1]  # fallback: smallest candidate (may still be large)
    for cand in n_cands:
        if vmem_cost(1, cand) <= budget:
            nt = cand
            break

    # Batch block: largest divisor of B that fits and (for B >= 2) leaves at
    # least two steps on the parallel axis so both v7x TensorCores get work.
    bt = 1
    for d in sorted((d for d in range(1, B + 1) if B % d == 0), reverse=True):
        if vmem_cost(d, nt) <= budget and (B == 1 or B // d >= 2):
            bt = d
            break
    return bt, nt


def _make_kernel(num_recurrent, bt, T, C, cdtype, precision):
    def kernel(*refs):
        if num_recurrent > 0:
            x_ref, wa_ref, wr_ref, o_ref, w_s, vt_prev, vt_acc, m_s, s_s = refs
        else:
            x_ref, wa_ref, o_ref, w_s, vt_prev, vt_acc, m_s, s_s = refs
            wr_ref = None

        l = pl.program_id(1)
        n = pl.program_id(2)
        last_l = pl.num_programs(1) - 1
        last_n = pl.num_programs(2) - 1

        x = x_ref[...].astype(cdtype)                      # (bt, C, Nt)

        # ---- per-layer init + (tiny) token-projection matmul ---------------
        @pl.when(n == 0)
        def _init():
            vt_acc[...] = jnp.zeros(vt_acc.shape, vt_acc.dtype)
            m_s[...] = jnp.full(m_s.shape, -jnp.inf, m_s.dtype)
            s_s[...] = jnp.zeros(s_s.shape, s_s.dtype)

            @pl.when(l == 0)
            def _():
                # Filter layer: projection is the static w_a weight.
                w_s[...] = jnp.broadcast_to(
                    wa_ref[...].astype(jnp.float32), (bt, T, C))

            if num_recurrent > 0:
                @pl.when(l > 0)
                def _():
                    # Recurrent layer: W_r = VT_prev @ W_tr^T (per batch).
                    wr_l = jnp.broadcast_to(
                        wr_ref[l - 1].astype(cdtype), (bt, C, C))
                    w_s[...] = jnp.einsum(
                        "btc,bdc->btd", vt_prev[...].astype(cdtype), wr_l,
                        preferred_element_type=jnp.float32,
                        precision=precision)

        # ---- shared heavy matmul: logits of this N tile ---------------------
        w = w_s[...].astype(cdtype)                        # (bt, T, C)
        lg = jnp.einsum("btc,bcn->btn", w, x,
                        preferred_element_type=jnp.float32,
                        precision=precision)               # (bt, T, Nt) f32

        # ---- filter layer: softmax over N (online across N tiles) ----------
        @pl.when(l == 0)
        def _filter():
            m_new = jnp.maximum(m_s[...], jnp.max(lg, axis=-1, keepdims=True))
            alpha = jnp.exp(m_s[...] - m_new)              # (bt, T, 1)
            p = jnp.exp(lg - m_new)                        # (bt, T, Nt)
            s_s[...] = alpha * s_s[...] + jnp.sum(p, axis=-1, keepdims=True)
            vt_acc[...] = alpha * vt_acc[...] + jnp.einsum(
                "btn,bcn->btc", p.astype(cdtype), x,
                preferred_element_type=jnp.float32, precision=precision)
            m_s[...] = m_new

            @pl.when(n == last_n)
            def _():
                vt = vt_acc[...] / s_s[...]    # normalize after the matmul
                vt_prev[...] = vt

                @pl.when(l == last_l)
                def _():
                    o_ref[...] = vt.astype(o_ref.dtype)

        # ---- recurrent layers: softmax over T (local per N column) ---------
        if num_recurrent > 0:
            @pl.when(l > 0)
            def _recurrent():
                m2 = jnp.max(lg, axis=1, keepdims=True)    # (bt, 1, Nt)
                p2 = jnp.exp(lg - m2)
                a2 = p2 / jnp.sum(p2, axis=1, keepdims=True)
                vt_acc[...] = vt_acc[...] + jnp.einsum(
                    "btn,bcn->btc", a2.astype(cdtype), x,
                    preferred_element_type=jnp.float32, precision=precision)

                @pl.when(n == last_n)
                def _():
                    vt = vt_acc[...]
                    vt_prev[...] = vt

                    @pl.when(l == last_l)
                    def _():
                        o_ref[...] = vt.astype(o_ref.dtype)

    return kernel


def tokenizer_forward(feature_map, wa_weight, wr_weights=None, *,
                      compute_dtype=None, precision=None,
                      batch_block=None, n_block=None, vmem_limit_bytes=None):
    """feature_map: (B, C, N)   PyTorch-style, channel-major, spatial flattened
       wa_weight:   (T, C)      nn.Linear(C, T, bias=False).weight
       wr_weights:  (L-1, C, C) stacked nn.Linear(C, C, bias=False).weight, or None
       returns:     (B, T, C)   visual tokens"""
    B, C, N = feature_map.shape
    T, C_w = wa_weight.shape
    assert C == C_w, (C, C_w)
    num_recurrent = 0 if wr_weights is None else int(wr_weights.shape[0])
    if num_recurrent:
        assert wr_weights.shape[1:] == (C, C), wr_weights.shape
    L = num_recurrent + 1

    cdtype = (jnp.dtype(compute_dtype) if compute_dtype is not None
              else jnp.dtype(feature_map.dtype))
    if precision is None and cdtype == jnp.float32:
        # Faithful-to-f32 default.  For the MXU-native fast path pass bf16
        # inputs (or compute_dtype=jnp.bfloat16).
        precision = lax.Precision.HIGHEST

    vmem_limit = (int(vmem_limit_bytes) if vmem_limit_bytes
                  else _default_vmem_limit_bytes())
    bt, nt = _choose_tiles(B, C, N, T, L,
                           jnp.dtype(feature_map.dtype).itemsize,
                           cdtype.itemsize, vmem_limit)
    if batch_block is not None:
        bt = int(batch_block)
    if n_block is not None:
        nt = int(n_block)
    assert B % bt == 0, (B, bt)
    assert N % nt == 0 and (nt == N or nt % 128 == 0), (N, nt)

    grid = (B // bt, L, N // nt)
    x_spec = pl.BlockSpec((bt, C, nt), lambda b, l, n: (b, 0, n))
    wa_spec = pl.BlockSpec((T, C), lambda b, l, n: (0, 0))
    out_spec = pl.BlockSpec((bt, T, C), lambda b, l, n: (b, 0, 0))

    if num_recurrent > 0:
        wr_spec = pl.BlockSpec((num_recurrent, C, C), lambda b, l, n: (0, 0, 0))
        in_specs = [x_spec, wa_spec, wr_spec]
        args = (feature_map, wa_weight, wr_weights)
    else:
        in_specs = [x_spec, wa_spec]
        args = (feature_map, wa_weight)

    kernel = _make_kernel(num_recurrent, bt, T, C, cdtype, precision)

    return pl.pallas_call(
        kernel,
        out_shape=jax.ShapeDtypeStruct((B, T, C), feature_map.dtype),
        grid_spec=pltpu.PrefetchScalarGridSpec(
            num_scalar_prefetch=0,
            grid=grid,
            in_specs=in_specs,
            out_specs=out_spec,
            scratch_shapes=[
                pltpu.VMEM((bt, T, C), jnp.float32),   # w_s     : current W
                pltpu.VMEM((bt, T, C), jnp.float32),   # vt_prev : prev-layer VT
                pltpu.VMEM((bt, T, C), jnp.float32),   # vt_acc  : accumulator
                pltpu.VMEM((bt, T, 1), jnp.float32),   # m_s     : online max
                pltpu.VMEM((bt, T, 1), jnp.float32),   # s_s     : online sum
            ],
        ),
        compiler_params=pltpu.CompilerParams(
            dimension_semantics=("parallel", "arbitrary", "arbitrary"),
            vmem_limit_bytes=vmem_limit,
        ),
    )(*args)


def _reference(feature_map, wa_weight, wr_weights):
    """Pure-JAX reference matching the PyTorch Tokenizer forward (f32, HIGHEST)."""
    hp = lax.Precision.HIGHEST
    x_t = jnp.transpose(feature_map, (0, 2, 1))                       # (B, N, C)
    logits = jnp.einsum("bnc,tc->bnt", x_t, wa_weight, precision=hp)  # (B, N, T)
    a = jax.nn.softmax(logits, axis=1)                                # over N
    vt = jnp.einsum("bnt,bnc->btc", a, x_t, precision=hp)             # (B, T, C)
    if wr_weights is not None:
        for l in range(wr_weights.shape[0]):
            w_r = jnp.einsum("btc,dc->btd", vt, wr_weights[l], precision=hp)
            lg = jnp.einsum("btc,bcn->btn", w_r, feature_map, precision=hp)
            a2 = jax.nn.softmax(lg, axis=1)                           # over T
            vt = jnp.einsum("btn,bnc->btc", a2, x_t, precision=hp)
    return vt


if __name__ == "__main__":
    key = jax.random.PRNGKey(0)
    k_x, k_wa, k_wr = jax.random.split(key, 3)

    B, C, H, W = 2, 32, 8, 8          # batch, n_channel, spatial
    N = H * W                         # flattened spatial extent
    T = 16                            # n_token
    n_token_layer = 3                 # 1 filter layer + 2 recurrent layers

    # deterministic xavier_uniform-style init (matches nn.init.xavier_uniform_)
    bound_a = (6.0 / (C + T)) ** 0.5
    wa = jax.random.uniform(k_wa, (T, C), jnp.float32, -bound_a, bound_a)
    bound_r = (6.0 / (C + C)) ** 0.5
    wr = jax.random.uniform(k_wr, (n_token_layer - 1, C, C), jnp.float32,
                            -bound_r, bound_r)
    feature_map = jax.random.normal(k_x, (B, C, N), jnp.float32)

    # f32 path (HIGHEST precision) vs. f32 reference — tight tolerance.
    out = jax.block_until_ready(tokenizer_forward(feature_map, wa, wr))
    ref = _reference(feature_map, wa, wr)
    assert out.shape == (B, T, C)
    err = float(jnp.max(jnp.abs(out - ref)))
    assert err < 1e-3, err

    # filter-only (single layer) path
    out1 = jax.block_until_ready(tokenizer_forward(feature_map, wa, None))
    ref1 = _reference(feature_map, wa, None)
    err1 = float(jnp.max(jnp.abs(out1 - ref1)))
    assert err1 < 1e-3, err1

    # bf16 MXU fast path — smoke test (shape / finiteness only).
    out_bf = jax.block_until_ready(
        tokenizer_forward(feature_map.astype(jnp.bfloat16),
                          wa.astype(jnp.bfloat16),
                          wr.astype(jnp.bfloat16)))
    assert out_bf.shape == (B, T, C)
    assert bool(jnp.all(jnp.isfinite(out_bf.astype(jnp.float32))))

    print("KERNEL_OK")
</pallas_src>

<mosaic_0001>
module attributes {stable_mosaic.version = 11 : i64} {
  func.func @kernel(%arg0: i32, %arg1: i32, %arg2: i32, %arg3: memref<1x32x64xf32, #tpu.memory_space<vmem>>, %arg4: memref<16x32xf32, #tpu.memory_space<vmem>>, %arg5: memref<2x32x32xf32, #tpu.memory_space<vmem>>, %arg6: memref<1x16x32xf32, #tpu.memory_space<vmem>>, %arg7: memref<1x16x32xf32, #tpu.memory_space<vmem>>, %arg8: memref<1x16x32xf32, #tpu.memory_space<vmem>>, %arg9: memref<1x16x32xf32, #tpu.memory_space<vmem>>, %arg10: memref<1x16x1xf32, #tpu.memory_space<vmem>>, %arg11: memref<1x16x1xf32, #tpu.memory_space<vmem>>) attributes {dimension_semantics = [#tpu.dimension_semantics<parallel>, #tpu.dimension_semantics<arbitrary>, #tpu.dimension_semantics<arbitrary>], iteration_bounds = array<i64: 2, 3, 1>, scalar_prefetch = 0 : i64, scratch_operands = 5 : i64, tpu.core_type = #tpu.core_type<tc>, window_params = [{transform_indices = @transform_0, window_bounds = array<i64: 1, 32, 64>}, {pipeline_mode = #tpu.pipeline_mode<synchronous>, transform_indices = @transform_1, window_bounds = array<i64: 16, 32>}, {pipeline_mode = #tpu.pipeline_mode<synchronous>, transform_indices = @transform_2, window_bounds = array<i64: 2, 32, 32>}, {transform_indices = @transform_3, window_bounds = array<i64: 1, 16, 32>}]} {
    %c0 = arith.constant 0 : index
    %c0_0 = arith.constant 0 : index
    %c0_1 = arith.constant 0 : index
    %0 = vector.load %arg3[%c0, %c0_0, %c0_1] : memref<1x32x64xf32, #tpu.memory_space<vmem>>, vector<1x32x64xf32>
    %c0_i32 = arith.constant 0 : i32
    %1 = arith.cmpi eq, %arg2, %c0_i32 : i32
    %2 = arith.extui %1 : i1 to i32
    %c0_i32_2 = arith.constant 0 : i32
    %3 = arith.cmpi ne, %2, %c0_i32_2 : i32
    scf.if %3 {
      %cst_10 = arith.constant 0.000000e+00 : f32
      %12 = vector.broadcast %cst_10 : f32 to vector<1x16x32xf32>
      %c0_11 = arith.constant 0 : index
      %c0_12 = arith.constant 0 : index
      %c0_13 = arith.constant 0 : index
      %13 = vector.load %arg9[%c0_11, %c0_12, %c0_13] : memref<1x16x32xf32, #tpu.memory_space<vmem>>, vector<1x16x32xf32>
      tpu.vector_store %arg9[%c0_11, %c0_12, %c0_13], %12 {strides = array<i32>} : memref<1x16x32xf32, #tpu.memory_space<vmem>>, vector<1x16x32xf32>,
      %cst_14 = arith.constant 0xFF800000 : f32
      %14 = vector.broadcast %cst_14 : f32 to vector<1x16x1xf32>
      %c0_15 = arith.constant 0 : index
      %c0_16 = arith.constant 0 : index
      %c0_17 = arith.constant 0 : index
      %15 = vector.load %arg10[%c0_15, %c0_16, %c0_17] : memref<1x16x1xf32, #tpu.memory_space<vmem>>, vector<1x16x1xf32>
      tpu.vector_store %arg10[%c0_15, %c0_16, %c0_17], %14 {strides = array<i32>} : memref<1x16x1xf32, #tpu.memory_space<vmem>>, vector<1x16x1xf32>,
      %cst_18 = arith.constant 0.000000e+00 : f32
      %16 = vector.broadcast %cst_18 : f32 to vector<1x16x1xf32>
      %c0_19 = arith.constant 0 : index
      %c0_20 = arith.constant 0 : index
      %c0_21 = arith.constant 0 : index
      %17 = vector.load %arg11[%c0_19, %c0_20, %c0_21] : memref<1x16x1xf32, #tpu.memory_space<vmem>>, vector<1x16x1xf32>
      tpu.vector_store %arg11[%c0_19, %c0_20, %c0_21], %16 {strides = array<i32>} : memref<1x16x1xf32, #tpu.memory_space<vmem>>, vector<1x16x1xf32>,
      %c0_i32_22 = arith.constant 0 : i32
      %18 = arith.cmpi eq, %arg1, %c0_i32_22 : i32
      %19 = arith.extui %18 : i1 to i32
      %c0_i32_23 = arith.constant 0 : i32
      %20 = arith.cmpi ne, %19, %c0_i32_23 : i32
      scf.if %20 {
        %c0_26 = arith.constant 0 : index
        %c0_27 = arith.constant 0 : index
        %24 = vector.load %arg4[%c0_26, %c0_27] : memref<16x32xf32, #tpu.memory_space<vmem>>, vector<16x32xf32>
        %25 = vector.shape_cast %24 : vector<16x32xf32> to vector<1x16x32xf32>
        %c0_28 = arith.constant 0 : index
        %c0_29 = arith.constant 0 : index
        %c0_30 = arith.constant 0 : index
        %26 = vector.load %arg7[%c0_28, %c0_29, %c0_30] : memref<1x16x32xf32, #tpu.memory_space<vmem>>, vector<1x16x32xf32>
        tpu.vector_store %arg7[%c0_28, %c0_29, %c0_30], %25 {strides = array<i32>} : memref<1x16x32xf32, #tpu.memory_space<vmem>>, vector<1x16x32xf32>,
      } else {
      }
      %c0_i32_24 = arith.constant 0 : i32
      %21 = arith.cmpi sgt, %arg1, %c0_i32_24 : i32
      %22 = arith.extui %21 : i1 to i32
      %c0_i32_25 = arith.constant 0 : i32
      %23 = arith.cmpi ne, %22, %c0_i32_25 : i32
      scf.if %23 {
        %c1_i32 = arith.constant 1 : i32
        %24 = arith.subi %arg1, %c1_i32 : i32
        %25 = arith.index_cast %24 : i32 to index
        %c0_26 = arith.constant 0 : index
        %c0_27 = arith.constant 0 : index
        %26 = vector.load %arg5[%25, %c0_26, %c0_27] : memref<2x32x32xf32, #tpu.memory_space<vmem>>, vector<1x32x32xf32>
        %27 = vector.shape_cast %26 : vector<1x32x32xf32> to vector<32x32xf32>
        %28 = vector.shape_cast %27 : vector<32x32xf32> to vector<1x32x32xf32>
        %c0_28 = arith.constant 0 : index
        %c0_29 = arith.constant 0 : index
        %c0_30 = arith.constant 0 : index
        %29 = vector.load %arg8[%c0_28, %c0_29, %c0_30] : memref<1x16x32xf32, #tpu.memory_space<vmem>>, vector<1x16x32xf32>
        "tpu.trace_start"() <{level = 10 : i32, message = "btc,bdc->btd"}> : () -> ()
        %cst_31 = arith.constant dense<0.000000e+00> : vector<1x16x32xf32>
        %30 = tpu.matmul %29, %28, %cst_31 {dimension_numbers = #tpu.dot_dimension_numbers<[2], [2], [1], [1], [0, 0, 0, 1, 1, 1], [0], [0]>, precision = #tpu.contract_precision<fp32>} : vector<1x16x32xf32>, vector<1x32x32xf32>, vector<1x16x32xf32> -> vector<1x16x32xf32>
        "tpu.trace_stop"() : () -> ()
        %c0_32 = arith.constant 0 : index
        %c0_33 = arith.constant 0 : index
        %c0_34 = arith.constant 0 : index
        %31 = vector.load %arg7[%c0_32, %c0_33, %c0_34] : memref<1x16x32xf32, #tpu.memory_space<vmem>>, vector<1x16x32xf32>
        tpu.vector_store %arg7[%c0_32, %c0_33, %c0_34], %30 {strides = array<i32>} : memref<1x16x32xf32, #tpu.memory_space<vmem>>, vector<1x16x32xf32>,
      } else {
      }
    } else {
    }
    %c0_3 = arith.constant 0 : index
    %c0_4 = arith.constant 0 : index
    %c0_5 = arith.constant 0 : index
    %4 = vector.load %arg7[%c0_3, %c0_4, %c0_5] : memref<1x16x32xf32, #tpu.memory_space<vmem>>, vector<1x16x32xf32>
    "tpu.trace_start"() <{level = 10 : i32, message = "btc,bcn->btn"}> : () -> ()
    %cst = arith.constant dense<0.000000e+00> : vector<1x16x64xf32>
    %5 = tpu.matmul %4, %0, %cst {dimension_numbers = #tpu.dot_dimension_numbers<[2], [1], [1], [2], [0, 0, 0, 1, 1, 2], [0], [0]>, precision = #tpu.contract_precision<fp32>} : vector<1x16x32xf32>, vector<1x32x64xf32>, vector<1x16x64xf32> -> vector<1x16x64xf32>
    %c0_i32_6 = arith.constant 0 : i32
    "tpu.trace_stop"() : () -> ()
    %6 = arith.cmpi eq, %arg1, %c0_i32_6 : i32
    %7 = arith.extui %6 : i1 to i32
    %c0_i32_7 = arith.constant 0 : i32
    %8 = arith.cmpi ne, %7, %c0_i32_7 : i32
    scf.if %8 {
      %c0_10 = arith.constant 0 : index
      %c0_11 = arith.constant 0 : index
      %c0_12 = arith.constant 0 : index
      %12 = vector.load %arg10[%c0_10, %c0_11, %c0_12] : memref<1x16x1xf32, #tpu.memory_space<vmem>>, vector<1x16x1xf32>
      %cst_13 = arith.constant dense<0xFF800000> : vector<1x16xf32>
      %13 = vector.multi_reduction <maximumf>, %5, %cst_13 [2] : vector<1x16x64xf32> to vector<1x16xf32>
      %14 = vector.shape_cast %13 : vector<1x16xf32> to vector<1x16x1xf32>
      %15 = arith.maximumf %12, %14 : vector<1x16x1xf32>
      %c0_14 = arith.constant 0 : index
      %c0_15 = arith.constant 0 : index
      %c0_16 = arith.constant 0 : index
      %16 = vector.load %arg10[%c0_14, %c0_15, %c0_16] : memref<1x16x1xf32, #tpu.memory_space<vmem>>, vector<1x16x1xf32>
      %17 = arith.subf %16, %15 : vector<1x16x1xf32>
      %18 = math.exp %17 : vector<1x16x1xf32>
      %19 = vector.broadcast %15 : vector<1x16x1xf32> to vector<1x16x64xf32>
      %20 = arith.subf %5, %19 : vector<1x16x64xf32>
      %21 = math.exp %20 : vector<1x16x64xf32>
      %c0_17 = arith.constant 0 : index
      %c0_18 = arith.constant 0 : index
      %c0_19 = arith.constant 0 : index
      %22 = vector.load %arg11[%c0_17, %c0_18, %c0_19] : memref<1x16x1xf32, #tpu.memory_space<vmem>>, vector<1x16x1xf32>
      %23 = arith.mulf %18, %22 : vector<1x16x1xf32>
      %cst_20 = arith.constant dense<0.000000e+00> : vector<1x16xf32>
      %24 = vector.multi_reduction <add>, %21, %cst_20 [2] : vector<1x16x64xf32> to vector<1x16xf32>
      %25 = vector.shape_cast %24 : vector<1x16xf32> to vector<1x16x1xf32>
      %26 = arith.addf %23, %25 : vector<1x16x1xf32>
      %c0_21 = arith.constant 0 : index
      %c0_22 = arith.constant 0 : index
      %c0_23 = arith.constant 0 : index
      %27 = vector.load %arg11[%c0_21, %c0_22, %c0_23] : memref<1x16x1xf32, #tpu.memory_space<vmem>>, vector<1x16x1xf32>
      tpu.vector_store %arg11[%c0_21, %c0_22, %c0_23], %26 {strides = array<i32>} : memref<1x16x1xf32, #tpu.memory_space<vmem>>, vector<1x16x1xf32>,
      %c0_24 = arith.constant 0 : index
      %c0_25 = arith.constant 0 : index
      %c0_26 = arith.constant 0 : index
      %28 = vector.load %arg9[%c0_24, %c0_25, %c0_26] : memref<1x16x32xf32, #tpu.memory_space<vmem>>, vector<1x16x32xf32>
      %29 = vector.broadcast %18 : vector<1x16x1xf32> to vector<1x16x32xf32>
      %30 = arith.mulf %29, %28 : vector<1x16x32xf32>
      "tpu.trace_start"() <{level = 10 : i32, message = "btn,bcn->btc"}> : () -> ()
      %cst_27 = arith.constant dense<0.000000e+00> : vector<1x16x32xf32>
      %31 = tpu.matmul %21, %0, %cst_27 {dimension_numbers = #tpu.dot_dimension_numbers<[2], [2], [1], [1], [0, 0, 0, 1, 1, 1], [0], [0]>, precision = #tpu.contract_precision<fp32>} : vector<1x16x64xf32>, vector<1x32x64xf32>, vector<1x16x32xf32> -> vector<1x16x32xf32>
      "tpu.trace_stop"() : () -> ()
      %32 = arith.addf %30, %31 : vector<1x16x32xf32>
      %c0_28 = arith.constant 0 : index
      %c0_29 = arith.constant 0 : index
      %c0_30 = arith.constant 0 : index
      %33 = vector.load %arg9[%c0_28, %c0_29, %c0_30] : memref<1x16x32xf32, #tpu.memory_space<vmem>>, vector<1x16x32xf32>
      tpu.vector_store %arg9[%c0_28, %c0_29, %c0_30], %32 {strides = array<i32>} : memref<1x16x32xf32, #tpu.memory_space<vmem>>, vector<1x16x32xf32>,
      %c0_31 = arith.constant 0 : index
      %c0_32 = arith.constant 0 : index
      %c0_33 = arith.constant 0 : index
      %34 = vector.load %arg10[%c0_31, %c0_32, %c0_33] : memref<1x16x1xf32, #tpu.memory_space<vmem>>, vector<1x16x1xf32>
      tpu.vector_store %arg10[%c0_31, %c0_32, %c0_33], %15 {strides = array<i32>} : memref<1x16x1xf32, #tpu.memory_space<vmem>>, vector<1x16x1xf32>,
      %c0_i32_34 = arith.constant 0 : i32
      %35 = arith.cmpi eq, %arg2, %c0_i32_34 : i32
      %36 = arith.extui %35 : i1 to i32
      %c0_i32_35 = arith.constant 0 : i32
      %37 = arith.cmpi ne, %36, %c0_i32_35 : i32
      scf.if %37 {
        %c0_36 = arith.constant 0 : index
        %c0_37 = arith.constant 0 : index
        %c0_38 = arith.constant 0 : index
        %38 = vector.load %arg9[%c0_36, %c0_37, %c0_38] : memref<1x16x32xf32, #tpu.memory_space<vmem>>, vector<1x16x32xf32>
        %c0_39 = arith.constant 0 : index
        %c0_40 = arith.constant 0 : index
        %c0_41 = arith.constant 0 : index
        %39 = vector.load %arg11[%c0_39, %c0_40, %c0_41] : memref<1x16x1xf32, #tpu.memory_space<vmem>>, vector<1x16x1xf32>
        %40 = vector.broadcast %39 : vector<1x16x1xf32> to vector<1x16x32xf32>
        %41 = arith.divf %38, %40 : vector<1x16x32xf32>
        %c0_42 = arith.constant 0 : index
        %c0_43 = arith.constant 0 : index
        %c0_44 = arith.constant 0 : index
        %42 = vector.load %arg8[%c0_42, %c0_43, %c0_44] : memref<1x16x32xf32, #tpu.memory_space<vmem>>, vector<1x16x32xf32>
        tpu.vector_store %arg8[%c0_42, %c0_43, %c0_44], %41 {strides = array<i32>} : memref<1x16x32xf32, #tpu.memory_space<vmem>>, vector<1x16x32xf32>,
        %c2_i32 = arith.constant 2 : i32
        %43 = arith.cmpi eq, %arg1, %c2_i32 : i32
        %44 = arith.extui %43 : i1 to i32
        %c0_i32_45 = arith.constant 0 : i32
        %45 = arith.cmpi ne, %44, %c0_i32_45 : i32
        scf.if %45 {
          %c0_46 = arith.constant 0 : index
          %c0_47 = arith.constant 0 : index
          %c0_48 = arith.constant 0 : index
          %46 = vector.load %arg6[%c0_46, %c0_47, %c0_48] : memref<1x16x32xf32, #tpu.memory_space<vmem>>, vector<1x16x32xf32>
          tpu.vector_store %arg6[%c0_46, %c0_47, %c0_48], %41 {strides = array<i32>} : memref<1x16x32xf32, #tpu.memory_space<vmem>>, vector<1x16x32xf32>,
        } else {
        }
      } else {
      }
    } else {
    }
    %c0_i32_8 = arith.constant 0 : i32
    %9 = arith.cmpi sgt, %arg1, %c0_i32_8 : i32
    %10 = arith.extui %9 : i1 to i32
    %c0_i32_9 = arith.constant 0 : i32
    %11 = arith.cmpi ne, %10, %c0_i32_9 : i32
    scf.if %11 {
      %cst_10 = arith.constant dense<0xFF800000> : vector<1x64xf32>
      %12 = vector.multi_reduction <maximumf>, %5, %cst_10 [1] : vector<1x16x64xf32> to vector<1x64xf32>
      %13 = vector.shape_cast %12 : vector<1x64xf32> to vector<1x1x64xf32>
      %14 = vector.broadcast %13 : vector<1x1x64xf32> to vector<1x16x64xf32>
      %15 = arith.subf %5, %14 : vector<1x16x64xf32>
      %16 = math.exp %15 : vector<1x16x64xf32>
      %cst_11 = arith.constant dense<0.000000e+00> : vector<1x64xf32>
      %17 = vector.multi_reduction <add>, %16, %cst_11 [1] : vector<1x16x64xf32> to vector<1x64xf32>
      %18 = vector.shape_cast %17 : vector<1x64xf32> to vector<1x1x64xf32>
      %19 = vector.broadcast %18 : vector<1x1x64xf32> to vector<1x16x64xf32>
      %20 = arith.divf %16, %19 : vector<1x16x64xf32>
      %c0_12 = arith.constant 0 : index
      %c0_13 = arith.constant 0 : index
      %c0_14 = arith.constant 0 : index
      %21 = vector.load %arg9[%c0_12, %c0_13, %c0_14] : memref<1x16x32xf32, #tpu.memory_space<vmem>>, vector<1x16x32xf32>
      "tpu.trace_start"() <{level = 10 : i32, message = "btn,bcn->btc"}> : () -> ()
      %cst_15 = arith.constant dense<0.000000e+00> : vector<1x16x32xf32>
      %22 = tpu.matmul %20, %0, %cst_15 {dimension_numbers = #tpu.dot_dimension_numbers<[2], [2], [1], [1], [0, 0, 0, 1, 1, 1], [0], [0]>, precision = #tpu.contract_precision<fp32>} : vector<1x16x64xf32>, vector<1x32x64xf32>, vector<1x16x32xf32> -> vector<1x16x32xf32>
      "tpu.trace_stop"() : () -> ()
      %23 = arith.addf %21, %22 : vector<1x16x32xf32>
      %c0_16 = arith.constant 0 : index
      %c0_17 = arith.constant 0 : index
      %c0_18 = arith.constant 0 : index
      %24 = vector.load %arg9[%c0_16, %c0_17, %c0_18] : memref<1x16x32xf32, #tpu.memory_space<vmem>>, vector<1x16x32xf32>
      tpu.vector_store %arg9[%c0_16, %c0_17, %c0_18], %23 {strides = array<i32>} : memref<1x16x32xf32, #tpu.memory_space<vmem>>, vector<1x16x32xf32>,
      %c0_i32_19 = arith.constant 0 : i32
      %25 = arith.cmpi eq, %arg2, %c0_i32_19 : i32
      %26 = arith.extui %25 : i1 to i32
      %c0_i32_20 = arith.constant 0 : i32
      %27 = arith.cmpi ne, %26, %c0_i32_20 : i32
      scf.if %27 {
        %c0_21 = arith.constant 0 : index
        %c0_22 = arith.constant 0 : index
        %c0_23 = arith.constant 0 : index
        %28 = vector.load %arg9[%c0_21, %c0_22, %c0_23] : memref<1x16x32xf32, #tpu.memory_space<vmem>>, vector<1x16x32xf32>
        %c0_24 = arith.constant 0 : index
        %c0_25 = arith.constant 0 : index
        %c0_26 = arith.constant 0 : index
        %29 = vector.load %arg8[%c0_24, %c0_25, %c0_26] : memref<1x16x32xf32, #tpu.memory_space<vmem>>, vector<1x16x32xf32>
        tpu.vector_store %arg8[%c0_24, %c0_25, %c0_26], %28 {strides = array<i32>} : memref<1x16x32xf32, #tpu.memory_space<vmem>>, vector<1x16x32xf32>,
        %c2_i32 = arith.constant 2 : i32
        %30 = arith.cmpi eq, %arg1, %c2_i32 : i32
        %31 = arith.extui %30 : i1 to i32
        %c0_i32_27 = arith.constant 0 : i32
        %32 = arith.cmpi ne, %31, %c0_i32_27 : i32
        scf.if %32 {
          %c0_28 = arith.constant 0 : index
          %c0_29 = arith.constant 0 : index
          %c0_30 = arith.constant 0 : index
          %33 = vector.load %arg6[%c0_28, %c0_29, %c0_30] : memref<1x16x32xf32, #tpu.memory_space<vmem>>, vector<1x16x32xf32>
          tpu.vector_store %arg6[%c0_28, %c0_29, %c0_30], %28 {strides = array<i32>} : memref<1x16x32xf32, #tpu.memory_space<vmem>>, vector<1x16x32xf32>,
        } else {
        }
      } else {
      }
    } else {
    }
    return
  }
  func.func @transform_0(%arg0: i32, %arg1: i32, %arg2: i32) -> (i32, i32, i32) {
    %c0_i32 = arith.constant 0 : i32
    %c0_i32_0 = arith.constant 0 : i32
    return %arg0, %c0_i32, %arg2 : i32, i32, i32
  }
  func.func @transform_1(%arg0: i32, %arg1: i32, %arg2: i32) -> (i32, i32) {
    %c0_i32 = arith.constant 0 : i32
    %c0_i32_0 = arith.constant 0 : i32
    %c0_i32_1 = arith.constant 0 : i32
    return %c0_i32, %c0_i32_0 : i32, i32
  }
  func.func @transform_2(%arg0: i32, %arg1: i32, %arg2: i32) -> (i32, i32, i32) {
    %c0_i32 = arith.constant 0 : i32
    %c0_i32_0 = arith.constant 0 : i32
    %c0_i32_1 = arith.constant 0 : i32
    %c0_i32_2 = arith.constant 0 : i32
    return %c0_i32, %c0_i32_0, %c0_i32_1 : i32, i32, i32
  }
  func.func @transform_3(%arg0: i32, %arg1: i32, %arg2: i32) -> (i32, i32, i32) {
    %c0_i32 = arith.constant 0 : i32
    %c0_i32_0 = arith.constant 0 : i32
    %c0_i32_1 = arith.constant 0 : i32
    return %arg0, %c0_i32, %c0_i32_0 : i32, i32, i32
  }
}

</mosaic_0001>

<bundles_post_ra>
// kernel: tpu_custom_call.1
= control target key start
LH: loop header
LB: loop body
LE: loop exit
PB: predicated region body
PF: predicated region fallthrough
CT: control target
= control target key end

     0   :  { %s2320_s0 = inlined_call_operand.hbm [shape: f32[2,32,64], index: 0, kind: input, shape index: {}]   ;;  %s2321_s1 = inlined_call_operand.hbm [shape: f32[16,32], index: 1, kind: input, shape index: {}]   ;;  %s2322_s2 = inlined_call_operand.hbm [shape: f32[2,32,32], index: 2, kind: input, shape index: {}]   ;;  %s2323_s3 = inlined_call_operand.hbm [shape: f32[2,16,32], index: 3, kind: output, shape index: {}]  }
   0x1   :  { %2327 = sst [smem:[#allocation19_spill]] %s2321_s1 }
   0x2   :  { %2328 = sst [smem:[#allocation20_spill]] %s2322_s2 }
   0x3   :  { %8 = vsyncpa [#allocation8], 0 }
   0x4   :  { %10 = vsyncpa [#allocation8 + $0x1], 0 }
   0x5   :  { %11 = vsyncpa [#allocation11], 0 }
   0x6   :  { %12 = vsyncpa [#allocation9], 0 }
   0x7   :  { %14 = vsyncpa [#allocation9 + $0x1], 0  ;;  %s1940_s12 = smov 0   ;;  %s1942_s13 = smov 0  }
   0x8   :  { %s1944_s14 = smov 0   ;;  %s1946_s15 = smov 0  }
   0x9   :  { %s1948_s16 = smov 0   ;;  %s1950_s17 = smov 0  }
   0xa   :  { %s1952_s18 = smov 0   ;;  %s1954_s19 = smov 0  }
   0xb LB: > { %2329 = sst [smem:[#allocation17_spill]] %s1901_s17  ;;  %s1529_s20 = sadd.s32 4294967295, %s1909_s19   ;;  %s1909_s19 = sphi %s1954_s19, %s20_s19   ;;  %s1905_s18 = sphi %s1952_s18, %s2347_s18   ;;  %s1901_s17 = sphi %s1950_s17, %s2342_s17   ;;  %s1897_s16 = sphi %s1948_s16, %s2346_s16   ;;  %s1893_s15 = sphi %s1946_s15, %s2341_s15   ;;  %s1889_s14 = sphi %s1944_s14, %s2345_s14   ;;  %s1885_s13 = sphi %s1942_s13, %s2344_s13   ;;  %s1881_s12 = sphi %s1940_s12, %s2343_s12  }
   0xc   : > { %s1530_s21 = sadd.s32 4294967294, %s1909_s19   ;;  %p61_p0 = scmp.ne.s32.totalorder %s1885_s13, %s1881_s12 }
   0xd   : > { %p1986_p1 = scmp.eq.s32.totalorder %s1529_s20, 0  ;;  %p133_p2 = scmp.eq.s32.totalorder %s1530_s21, 5 }
   0xe   : > { %p1531_p4 = scmp.ge.s32.totalorder %s1909_s19, 1  ;;  %p140_p6 = scmp.lt.s32.totalorder %s1909_s19, 7 }
   0xf   : > { %p1992_p3 = por %p1986_p1, %p61_p0  ;;  %p1997_p5 = por %p133_p2, %p61_p0 }
  0x10   : > { %s2333_s1 = sld [smem:[#allocation19_spill]]  ;;  %p2005_p7 = pnand %p1531_p4, %p140_p6 }
  0x11   : > { %s1911_s29 = smov [#allocation10]   ;;  %s2335_s2 = sld [smem:[#allocation20_spill]] }
  0x12   : > { %p1602_p8 = pneg %p2005_p7  ;;  %s153_s30 = sshll.u32 %s1911_s29, 4  ;;  %s154_s30 = int_to_ptr.vmem [resolvable:$true] %s153_s30 }
  0x13   : > { %s2324_s7 = smov 128   ;;  %s2325_s8 = smov 8  }
  0x14   : > { %p1603_p9 = pnand %p1602_p8, %p1986_p1  ;;  %s1914_s9 = smov [#allocation12]  }
  0x15   : > { %s167_s10 = sshll.u32 %s1914_s9, 4  ;;  %p127_p10 = scmp.eq.s32.totalorder %s1529_s20, 5  ;;  %s168_s10 = int_to_ptr.vmem [resolvable:$true] %s167_s10 }
  0x16   : > { %s151_s27 = sshll.u32 %s2333_s1, 4  ;;  %s35_s11 = sadd.s32 1, %s1901_s17  ;;  %s152_s27 = int_to_ptr.hbm [resolvable:$true] %s151_s27 }
  0x17   : > { %s165_s6 = sshll.u32 %s2335_s2, 4  ;;  %p37_p11 = scmp.ge.s32.totalorder %s35_s11, 3  ;;  %s166_s6 = int_to_ptr.hbm [resolvable:$true] %s165_s6 }
  0x18   : > { %1605 = dma.hbm_to_vmem [thread:$0]  (!%p1603_p9), %s152_s27, 256, %s154_s30, [#allocation11], %s2324_s7, %s2324_s7, %s2325_s8  }
  0x19   : > { %1608 = dma.hbm_to_vmem [thread:$0]  (!%p1603_p9), %s166_s6, 1024, %s168_s10, [#allocation11], %s2324_s7, %s2324_s7, %s2325_s8  }
  0x1a   : > { %s39_s21 = sadd.s32 1, %s1905_s18  ;;  %p55_p12 = scmp.ne.s32.totalorder %s1889_s14, %s1885_s13 }
  0x1b   : > { %p56_p13 = scmp.eq.s32.totalorder %s1909_s19, 0  ;;  %s2349_s11 = smov (%p37_p11, %s35_s11), 0 }
  0x1c   : > { %2336 = sst [smem:[#allocation18_spill]] %s2349_s11  ;;  %s2351_s21 = smov (!%p37_p11, %s39_s21), %s1905_s18 }
  0x1d   : > { %s48_s25 = sadd.s32 1, %s1889_s14  ;;  %p2033_p0 = por %p127_p10, %p55_p12 }
  0x1e   : > { %p41_p2 = scmp.ge.s32.totalorder %s2351_s21, 2  ;;  %p2037_p4 = por %p56_p13, %p55_p12 }
  0x1f   : > { %s181_s20 = sand.u32 1, %s1889_s14   ;;  %s1556_s29 = sshll.u32 %s1905_s18, 5 }
  0x20   : > { %s2353_s21 = smov (%p41_p2, %s2351_s21), 0  ;;  %p1619_p6 = scmp.lt.s32.totalorder %s1909_s19, 6 }
  0x21   : > { %s1535_s30 = sshll.u32 %s181_s20, 5  ;;  %s43_s4 = ssub.s32 %s1905_s18, %s2353_s21 }
  0x22   : > { %p46_p8 = scmp.eq.s32.totalorder %s43_s4, 0  ;;  %s191_s9 = scalar_lea.hbm %s2320_s0, %s1556_s29 }
  0x23   : > { %s192_s10 = sshll.u32 %s191_s9, 4  ;;  %s185_s7 = scalar_lea.vmem [#allocation7], %s1535_s30  ;;  %s193_s10 = int_to_ptr.hbm [resolvable:$true] %s192_s10 }
  0x24   : > { %s194_s8 = sshll.u32 %s185_s7, 4  ;;  %p1610_p9 = pnand %p1619_p6, %p2037_p4  ;;  %s195_s8 = int_to_ptr.vmem [resolvable:$true] %s194_s8 }
  0x25   : > { %s2052_s1 = scalar_select %p46_p8, %s1889_s14, %s48_s25  }
  0x26   : > { %s182_s2 = scalar_lea.sflag [#allocation8], %s181_s20  ;;  %s2339_s11 = smov 8  }
  0x27   : > { %s2340_s17 = smov 128   ;;  %206 = sbr.rel (%p2005_p7) target bundleno = 1190 (0x4a6), region = 32 }
  0x28   : > { %1612 = dma.hbm_to_vmem [thread:$0]  (!%p1610_p9), %s193_s10, 512, %s195_s8, %s182_s2, %s2340_s17, %s2340_s17, %s2339_s11  }
  0x29   : > { %s2062_s29 = sand.u32 (!%p2005_p7), 1, %s1885_s13  }
  0x2a   : > { %s1539_s7 = sshll.u32 (!%p2005_p7), %s2062_s29, 5  ;;  %s209_s25 = scalar_lea.sflag (!%p2005_p7), [#allocation8], %s2062_s29 }
  0x2b   : > { %s212_s30 = scalar_lea.vmem (!%p2005_p7), [#allocation7], %s1539_s7 }
  0x2c   : > { %1868 = dma.done.wait (%p1992_p3), %s209_s25, 512  }
  0x2d   : > { %1870 = vsyncadd (%p1992_p3), %s209_s25, 4294966784 }
  0x2e   : > { %1872 = dma.done.wait (%p1986_p1), [#allocation11], 1280  }
  0x2f   : > { %1874 = vsyncadd (%p1986_p1), [#allocation11], 4294966016  ;;  %s1542_s2 = sshll.u32 %s2062_s29, 4  ;;  %vm254_vm0 = vcmask 261120   ;;  %vm257_vm1 = vcmask 7168   ;;  %v1915_v0 = vmov 0.0  }
  0x30   : > { %255 = vst.msk [vmem:[#allocation4] sm:$0xff] %vm254_vm0, %v1915_v0  ;;  %v1916_v1 = vmov -inf   ;;  %v2081_v2 = vld [vmem:[%s212_s30] sm:$0xff]  ;;  %v2083_v3 = vld [vmem:[%s212_s30 + $0x8] sm:$0xff]  ;;  %v2085_v4 = vld [vmem:[%s212_s30 + $0x10] sm:$0xff]  ;;  %s2089_s17 = scalar_lea.vmem [#allocation13], %s1542_s2 }
  0x31   : > { %256 = vst.msk [vmem:[#allocation4 + $0x8] sm:$0xff] %vm254_vm0, %v1915_v0  ;;  %v2087_v5 = vld [vmem:[%s212_s30 + $0x18] sm:$0xff]  ;;  %p1543_p1 = scmp.ne.s32.totalorder %s1893_s15, 0 }
  0x32   : > { %258 = vst.msk [vmem:[#allocation5] sm:$0xff] %vm257_vm1, %v1916_v1 }
  0x33   : > { %259 = vst.msk [vmem:[#allocation5 + $0x8] sm:$0xff] %vm257_vm1, %v1916_v1  ;;  %265 = sbr.rel (%p1543_p1) target bundleno = 59 (0x3b), region = 52 }
  0x34   : > { %260 = vst.msk [vmem:[#allocation6] sm:$0xff] %vm257_vm1, %v1915_v0 }
  0x35   : > { %261 = vst.msk [vmem:[#allocation6 + $0x8] sm:$0xff] %vm257_vm1, %v1915_v0 }
  0x38   : > { %v266_v6 = vld [vmem:[#allocation10] sm:$0xff]  ;;  %v267_v7 = vld [vmem:[#allocation10 + $0x8] sm:$0xff] }
  0x39   : > { %268 = vst.msk [vmem:[#allocation2] sm:$0xff] %vm254_vm0, %v266_v6 }
  0x3a   : > { %269 = vst.msk [vmem:[#allocation2 + $0x8] sm:$0xff] %vm254_vm0, %v267_v7 }
  0x3b PF: > { %p1544_p3 = scmp.le.s32.totalorder %s1893_s15, 0 }
  0x3c   : > { %s1545_s22 = sadd.s32 (!%p1544_p3), 4294967295, %s1893_s15 }
  0x3d   : > { %273 = sbr.rel (%p1544_p3) target bundleno = 241 (0xf1), region = 56  ;;  %s1546_s23 = sshll.u32 (!%p1544_p3), %s1545_s22, 5 }
  0x3e   : > { %s276_s28 = scalar_lea.vmem (!%p1544_p3), [#allocation12], %s1546_s23 }
  0x42   : > { %v281_v8 = vld [vmem:[#allocation3] sm:$0xff]  ;;  %v282_v11 = vld [vmem:[#allocation3 + $0x8] sm:$0xff]  ;;  %v278_v14 = vld [vmem:[%s276_s28 + $0x8] sm:$0xff] }
  0x43   : > { %v284_v9 = vsel %vm254_vm0, %v281_v8, 0  ;;  %v280_v12 = vld [vmem:[%s276_s28 + $0x18] sm:$0xff]  ;;  %v279_v13 = vld [vmem:[%s276_s28 + $0x10] sm:$0xff]  ;;  %v293_v17 = vsel %vm254_vm0, %v278_v14, 0  ;;  %v277_v18 = vld [vmem:[%s276_s28] sm:$0xff]  ;;  %v287_v24 = vsel %vm254_vm0, %v282_v11, 0 }
  0x44   : > { %v2101_v10 = vand.u32 4294901760, %v284_v9  ;;  %v299_v15 = vsel %vm254_vm0, %v280_v12, 0  ;;  %v296_v16 = vsel %vm254_vm0, %v279_v13, 0  ;;  %v2108_v21 = vand.u32 4294901760, %v293_v17 }
  0x45   : > { %v313_v19 = vand.u32 4294901760, %v299_v15  ;;  %v2106_v20 = vand.u32 4294901760, %v296_v16  ;;  %v290_v22 = vsel %vm254_vm0, %v277_v18, 0  ;;  %v329_v32 = vand.u32 4294901760, %v287_v24 }
  0x46   : > { %v322_v23 = vsub.f32 %v284_v9, %v2101_v10  ;;  %v363_v27 = vsub.f32 %v293_v17, %v2108_v21  ;;  %v319_v28 = vand.u32 4294901760, %v290_v22 }
  0x47   : > { %314 = vmatpush.xpose.msra.mxu0 %v313_v19  ;;  %v351_v25 = vsub.f32 %v299_v15, %v313_v19  ;;  %431 = vmatpush.xpose.msra.mxu3 %v313_v19  ;;  %v357_v26 = vsub.f32 %v296_v16, %v2106_v20  ;;  %v330_v39 = vsub.f32 %v287_v24, %v329_v32 }
  0x48   : > { %v323_v31 = vand.u32 4294901760, %v322_v23  ;;  %v369_v35 = vsub.f32 %v290_v22, %v319_v28  ;;  %v364_v36 = vand.u32 4294901760, %v363_v27 }
  0x49   : > { %397 = vmatpush.xpose.msra.mxu2 %v351_v25  ;;  %v352_v29 = vand.u32 4294901760, %v351_v25  ;;  %v358_v30 = vand.u32 4294901760, %v357_v26  ;;  %v331_v44 = vand.u32 4294901760, %v330_v39 }
  0x4a   : > { %v324_v38 = vsub.f32 %v322_v23, %v323_v31  ;;  %v365_v41 = vsub.f32 %v363_v27, %v364_v36  ;;  %v370_v42 = vand.u32 4294901760, %v369_v35 }
  0x4b   : > { %316 = vmatpush.xpose.msra.mxu0 %v2106_v20  ;;  %v353_v33 = vsub.f32 %v351_v25, %v352_v29  ;;  %433 = vmatpush.xpose.msra.mxu3 %v2106_v20  ;;  %v359_v34 = vsub.f32 %v357_v26, %v358_v30  ;;  %v332_v47 = vsub.f32 %v330_v39, %v331_v44 }
  0x4c   : > { %v325_v43 = vand.u32 4294901760, %v324_v38  ;;  %v366_v45 = vand.u32 4294901760, %v365_v41  ;;  %v371_v46 = vsub.f32 %v369_v35, %v370_v42 }
  0x4d   : > { %400 = vmatpush.xpose.msra.mxu2 %v357_v26  ;;  %v354_v37 = vand.u32 4294901760, %v353_v33  ;;  %v360_v40 = vand.u32 4294901760, %v359_v34  ;;  %v333_v49 = vand.u32 4294901760, %v332_v47 }
  0x4e   : > { %v372_v48 = vand.u32 4294901760, %v371_v46 }
  0x4f   : > { %318 = vmatpush.xpose.msra.mxu0 %v2108_v21  ;;  %355 = vmatpush.xpose.msra.mxu1 %v354_v37 }
  0x50   : > { %435 = vmatpush.xpose.msra.mxu3 %v2108_v21 }
  0x51   : > { %403 = vmatpush.xpose.msra.mxu2 %v363_v27 }
  0x53   : > { %320 = vmatpush.xpose.msra.mxu0 %v319_v28  ;;  %361 = vmatpush.xpose.msra.mxu1 %v360_v40 }
  0x54   : > { %437 = vmatpush.xpose.msra.mxu3 %v319_v28 }
  0x55   : > { %406 = vmatpush.xpose.msra.mxu2 %v369_v35 }
  0x56   : > { %326 = vmatmul.f32.vlgmr.msra.gmra.mxu0 %v325_v43 }
  0x57   : > { %466 = vmatpush.xpose.msrb.mxu0 %v352_v29  ;;  %367 = vmatpush.xpose.msra.mxu1 %v366_v45 }
  0x58   : > { %1562 = vmatpush.xpose.msrb.mxu3 %v313_v19  ;;  %409 = vmatmul.f32.vlgmr.msra.gmra.mxu2 %v322_v23 }
  0x59   : > { %1558 = vmatpush.xpose.msrb.mxu2 %v352_v29  ;;  %441 = vmatmul.f32.vlgmr.msra.gmra.mxu3 %v323_v31 }
  0x5b   : > { %470 = vmatpush.xpose.msrb.mxu0 %v358_v30  ;;  %373 = vmatpush.xpose.msra.mxu1 %v372_v48 }
  0x5c   : > { %1563 = vmatpush.xpose.msrb.mxu3 %v2106_v20 }
  0x5d   : > { %1559 = vmatpush.xpose.msrb.mxu2 %v358_v30 }
  0x5e   : > { %334 = vmatmul.f32.gmra.mxu0 %v333_v49  ;;  %375 = vmatmul.f32.vlgmr.msra.gmra.mxu1 %v2101_v10 }
  0x5f   : > { %474 = vmatpush.xpose.msrb.mxu0 %v364_v36  ;;  %501 = vmatpush.xpose.msrb.mxu1 %v313_v19 }
  0x60   : > { %1564 = vmatpush.xpose.msrb.mxu3 %v2108_v21  ;;  %414 = vmatmul.f32.gmra.mxu2 %v330_v39 }
  0x61   : > { %1560 = vmatpush.xpose.msrb.mxu2 %v364_v36  ;;  %447 = vmatmul.f32.gmra.mxu3 %v331_v44 }
  0x63   : > { %478 = vmatpush.xpose.msrb.mxu0 %v370_v42  ;;  %503 = vmatpush.xpose.msrb.mxu1 %v2106_v20 }
  0x64   : > { %1565 = vmatpush.xpose.msrb.mxu3 %v319_v28 }
  0x65   : > { %1561 = vmatpush.xpose.msrb.mxu2 %v370_v42 }
  0x66   : > { %379 = vmatmul.f32.gmra.mxu1 %v329_v32  ;;  %480 = vmatmul.f32.vlgmr.msrb.gmra.mxu0 %v2101_v10 }
  0x67   : > { %505 = vmatpush.xpose.msrb.mxu1 %v2108_v21 }
  0x68   : > { %484 = vmatmul.f32.vlgmr.msrb.gmra.mxu2 %v329_v32 }
  0x69   : > { %513 = vmatmul.f32.vlgmr.msrb.gmra.mxu3 %v329_v32 }
  0x6b   : > { %507 = vmatpush.xpose.msrb.mxu1 %v319_v28 }
  0x6e   : > { %509 = vmatmul.f32.vlgmr.msrb.gmra.mxu1 %v2101_v10 }
  0xd3   : > { %v327_v50 = vpop.f32.mrf.mxu0 }
  0xdb   : > { %v376_v52 = vpop.f32.mrf.mxu1  ;;  %v410_v53 = vpop.f32.mrf.mxu2 }
  0xdc   : > { %v442_v51 = vpop.f32.mrf.mxu3  ;;  %v335_v54 = vpop.f32.mrf.mxu0  ;;  %v377_v55 = vadd.f32 %v376_v52, %v327_v50 }
  0xde   : > { %v411_v58 = vadd.f32 %v410_v53, %v377_v55 }
  0xe0   : > { %v443_v63 = vadd.f32 %v442_v51, %v411_v58 }
  0xe3   : > { %v380_v57 = vpop.f32.mrf.mxu1  ;;  %v415_v60 = vpop.f32.mrf.mxu2 }
  0xe4   : > { %v448_v56 = vpop.f32.mrf.mxu3  ;;  %v381_v59 = vadd.f32 %v380_v57, %v335_v54  ;;  %v481_v62 = vpop.f32.mrf.mxu0 }
  0xe5   : > { %v482_v0 = vadd.f32 %v481_v62, %v443_v63 }
  0xe6   : > { %v416_v61 = vadd.f32 %v415_v60, %v381_v59 }
  0xe8   : > { %v449_v1 = vadd.f32 %v448_v56, %v416_v61 }
  0xeb   : > { %v510_v6 = vpop.f32.mrf.mxu1  ;;  %v485_v7 = vpop.f32.mrf.mxu2 }
  0xec   : > { %v511_v8 = vadd.f32 %v510_v6, %v482_v0  ;;  %v514_v9 = vpop.f32.mrf.mxu3  ;;  %v486_v10 = vadd.f32 %v485_v7, %v449_v1 }
  0xee   : > { %517 = vst.msk [vmem:[#allocation2] sm:$0xff] %vm254_vm0, %v511_v8  ;;  %v515_v11 = vadd.f32 %v514_v9, %v486_v10 }
  0xf0   : > { %518 = vst.msk [vmem:[#allocation2 + $0x8] sm:$0xff] %vm254_vm0, %v515_v11 }
  0xf1 PF: > { %v540_v12 = vand.u32 4294901760, %v2087_v5  ;;  %v2130_v13 = vand.u32 4294901760, %v2085_v4  ;;  %v2133_v14 = vand.u32 4294901760, %v2083_v3  ;;  %v2136_v15 = vand.u32 4294901760, %v2081_v2  ;;  %p1548_p7 = scmp.ne.s32.totalorder (!%p1543_p1), %s1893_s15, 2 }
  0xf3   : > { %1566 = vmatpush.msra.mxu2 %v540_v12  ;;  %v578_v20 = vsub.f32 %v2087_v5, %v540_v12  ;;  %v584_v22 = vsub.f32 %v2085_v4, %v2130_v13  ;;  %v590_v23 = vsub.f32 %v2083_v3, %v2133_v14  ;;  %541 = vmatpush.msra.mxu0 %v540_v12 }
  0xf4   : > { %v596_v24 = vsub.f32 %v2081_v2, %v2136_v15 }
  0xf5   : > { %v519_v17 = vld [vmem:[#allocation2] sm:$0xff]  ;;  %1567 = vmatpush.msra.mxu2 %v2130_v13  ;;  %v579_v26 = vand.u32 4294901760, %v578_v20  ;;  %v585_v28 = vand.u32 4294901760, %v584_v22  ;;  %v591_v29 = vand.u32 4294901760, %v590_v23  ;;  %543 = vmatpush.msra.mxu0 %v2130_v13 }
  0xf6   : > { %v523_v19 = vsel %vm254_vm0, %v519_v17, 0  ;;  %v597_v30 = vand.u32 4294901760, %v596_v24 }
  0xf7   : > { %v520_v16 = vld [vmem:[#allocation2 + $0x8] sm:$0xff]  ;;  %v548_v25 = vand.u32 4294901760, %v523_v19  ;;  %1568 = vmatpush.msra.mxu2 %v2133_v14  ;;  %v580_v32 = vsub.f32 %v578_v20, %v579_v26  ;;  %v586_v34 = vsub.f32 %v584_v22, %v585_v28  ;;  %v592_v35 = vsub.f32 %v590_v23, %v591_v29  ;;  %545 = vmatpush.msra.mxu0 %v2133_v14 }
  0xf8   : > { %v526_v18 = vsel %vm254_vm0, %v520_v16, 0  ;;  %v598_v40 = vsub.f32 %v596_v24, %v597_v30 }
  0xf9   : > { %v2141_v21 = vand.u32 4294901760, %v526_v18  ;;  %v549_v31 = vsub.f32 %v523_v19, %v548_v25  ;;  %v581_v37 = vand.u32 4294901760, %v580_v32  ;;  %1569 = vmatpush.msra.mxu2 %v2136_v15  ;;  %v587_v39 = vand.u32 4294901760, %v586_v34  ;;  %547 = vmatpush.msra.mxu0 %v2136_v15 }
  0xfa   : > { %v593_v43 = vand.u32 4294901760, %v592_v35  ;;  %v599_v45 = vand.u32 4294901760, %v598_v40 }
  0xfb   : > { %v557_v27 = vsub.f32 %v526_v18, %v2141_v21  ;;  %v550_v36 = vand.u32 4294901760, %v549_v31  ;;  %624 = vmatpush.msrb.mxu2 %v578_v20  ;;  %693 = vmatpush.msrb.mxu0 %v579_v26 }
  0xfc   : > { %1570 = vmatpush.msra.mxu3 %v581_v37  ;;  %582 = vmatpush.msra.mxu1 %v581_v37 }
  0xfd   : > { %v558_v33 = vand.u32 4294901760, %v557_v27  ;;  %v551_v41 = vsub.f32 %v549_v31, %v550_v36  ;;  %627 = vmatpush.msrb.mxu2 %v584_v22  ;;  %697 = vmatpush.msrb.mxu0 %v585_v28 }
  0xfe   : > { %1571 = vmatpush.msra.mxu3 %v587_v39  ;;  %588 = vmatpush.msra.mxu1 %v587_v39 }
  0xff   : > { %v559_v38 = vsub.f32 %v557_v27, %v558_v33  ;;  %v552_v44 = vand.u32 4294901760, %v551_v41  ;;  %630 = vmatpush.msrb.mxu2 %v590_v23  ;;  %701 = vmatpush.msrb.mxu0 %v591_v29 }
 0x100   : > { %1572 = vmatpush.msra.mxu3 %v593_v43  ;;  %594 = vmatpush.msra.mxu1 %v593_v43 }
 0x101   : > { %v560_v42 = vand.u32 4294901760, %v559_v38  ;;  %553 = vmatmul.f32.vlgmr.msra.gmra.mxu0 %v552_v44  ;;  %633 = vmatpush.msrb.mxu2 %v596_v24 }
 0x102   : > { %1573 = vmatpush.msra.mxu3 %v599_v45  ;;  %600 = vmatpush.msra.mxu1 %v599_v45 }
 0x103   : > { %561 = vmatmul.f32.vlgmr.msra.gmra.mxu2 %v560_v42  ;;  %606 = vmatmul.f32.vlgmr.msra.gmra.mxu3 %v2141_v21 }
 0x104   : > { %658 = vmatpush.msrb.mxu3 %v540_v12  ;;  %602 = vmatmul.f32.vlgmr.msra.gmra.mxu1 %v548_v25 }
 0x105   : > { %728 = vmatpush.msrb.mxu1 %v540_v12  ;;  %705 = vmatpush.msrb.mxu0 %v597_v30 }
 0x106   : > { %660 = vmatpush.msrb.mxu3 %v2130_v13 }
 0x107   : > { %730 = vmatpush.msrb.mxu1 %v2130_v13 }
 0x108   : > { %662 = vmatpush.msrb.mxu3 %v2133_v14 }
 0x109   : > { %707 = vmatmul.f32.vlgmr.msrb.gmra.mxu0 %v548_v25  ;;  %732 = vmatpush.msrb.mxu1 %v2133_v14 }
 0x10a   : > { %664 = vmatpush.msrb.mxu3 %v2136_v15 }
 0x10b   : > { %636 = vmatmul.f32.vlgmr.msrb.gmra.mxu2 %v549_v31  ;;  %668 = vmatmul.f32.vlgmr.msrb.gmra.mxu3 %v550_v36 }
 0x10c   : > { %734 = vmatpush.msrb.mxu1 %v2136_v15 }
 0x10d   : > { %736 = vmatmul.f32.vlgmr.msrb.gmra.mxu1 %v548_v25 }
 0x111   : > { %711 = vmatmul.f32.gmra.mxu0 %v2141_v21 }
 0x113   : > { %641 = vmatmul.f32.gmra.mxu2 %v557_v27  ;;  %674 = vmatmul.f32.gmra.mxu3 %v558_v33 }
 0x115   : > { %740 = vmatmul.f32.gmra.mxu1 %v2141_v21 }
 0x17e   : > { %v554_v47 = vpop.f32.mrf.mxu0 }
 0x181   : > { %v603_v49 = vpop.f32.mrf.mxu1 }
 0x182   : > { %v604_v50 = vadd.f32 %v603_v49, %v554_v47 }
 0x186   : > { %v562_v46 = vpop.f32.mrf.mxu2  ;;  %v607_v48 = vpop.f32.mrf.mxu3 }
 0x187   : > { %v708_v52 = vpop.f32.mrf.mxu0  ;;  %v608_v59 = vadd.f32 %v607_v48, %v562_v46 }
 0x18a   : > { %v737_v55 = vpop.f32.mrf.mxu1 }
 0x18e   : > { %v637_v51 = vpop.f32.mrf.mxu2  ;;  %v669_v54 = vpop.f32.mrf.mxu3 }
 0x18f   : > { %v638_v53 = vadd.f32 %v637_v51, %v604_v50  ;;  %v712_v63 = vpop.f32.mrf.mxu0 }
 0x191   : > { %v670_v56 = vadd.f32 %v669_v54, %v638_v53 }
 0x192   : > { %v741_v1 = vpop.f32.mrf.mxu1 }
 0x193   : > { %v709_v57 = vadd.f32 %v708_v52, %v670_v56 }
 0x195   : > { %v2165_v60 = vadd.f32 %v737_v55, %v709_v57 }
 0x196   : > { %v642_v58 = vpop.f32.mrf.mxu2  ;;  %v675_v62 = vpop.f32.mrf.mxu3 }
 0x197   : > { %v643_v61 = vadd.f32 %v642_v58, %v608_v59 }
 0x199   : > { %v676_v0 = vadd.f32 %v675_v62, %v643_v61  ;;  %747 = sbr.rel (%p1543_p1) target bundleno = 935 (0x3a7), region = 60 }
 0x19b   : > { %v713_v6 = vadd.f32 %v712_v63, %v676_v0 }
 0x19d   : > { %v2167_v7 = vadd.f32 %v741_v1, %v713_v6 }
 0x19e   : > { %vm750_vm2 = vcmask 523264   ;;  %v1917_v10 = vmov 0   ;;  %v2177_v17 = vld [vmem:[#allocation5] sm:$0xff]  ;;  %v2187_v21 = vld [vmem:[#allocation5 + $0x8] sm:$0xff] }
 0x19f   : > { %v751_v8 = vsel %vm750_vm2, %v2165_v60, -inf  ;;  %v754_v9 = vsel %vm750_vm2, %v2167_v7, -inf  ;;  %1696 = vset.pattern.permute.xlu1 %v1917_v10  ;;  %1698 = vset.pattern.permute.xlu2 %v1917_v10  ;;  %v826_v11 = vsel %vm750_vm2, %v2087_v5, 0  ;;  %v823_v25 = vsel %vm750_vm2, %v2085_v4, 0 }
 0x1a0   : > { %752 = vmax.xlane.f32.xlu0 %v751_v8  ;;  %v840_v12 = vand.u32 4294901760, %v826_v11  ;;  %v842_v26 = vand.u32 4294901760, %v823_v25  ;;  %v820_v28 = vsel %vm750_vm2, %v2083_v3, 0  ;;  %v817_v33 = vsel %vm750_vm2, %v2081_v2, 0 }
 0x1a1   : > { %1697 = vset.pattern.permute.xlu0 %v1917_v10  ;;  %v844_v30 = vand.u32 4294901760, %v820_v28  ;;  %v846_v36 = vand.u32 4294901760, %v817_v33  ;;  %v781_v10 = vld [vmem:[#allocation6] sm:$0xff] }
 0x1a2   : > { %v878_v13 = vsub.f32 %v826_v11, %v840_v12  ;;  %958 = vmatpush.xpose.msra.mxu3 %v840_v12  ;;  %841 = vmatpush.xpose.msra.mxu0 %v840_v12  ;;  %v884_v27 = vsub.f32 %v823_v25, %v842_v26 }
 0x1a3   : > { %v890_v32 = vsub.f32 %v820_v28, %v844_v30  ;;  %v896_v38 = vsub.f32 %v817_v33, %v846_v36 }
 0x1a4   : > { %v879_v14 = vand.u32 4294901760, %v878_v13  ;;  %924 = vmatpush.xpose.msra.mxu2 %v878_v13  ;;  %v885_v29 = vand.u32 4294901760, %v884_v27 }
 0x1a5   : > { %v891_v35 = vand.u32 4294901760, %v890_v32  ;;  %v897_v40 = vand.u32 4294901760, %v896_v38 }
 0x1a6   : > { %v880_v15 = vsub.f32 %v878_v13, %v879_v14  ;;  %960 = vmatpush.xpose.msra.mxu3 %v842_v26  ;;  %843 = vmatpush.xpose.msra.mxu0 %v842_v26  ;;  %v886_v31 = vsub.f32 %v884_v27, %v885_v29 }
 0x1a7   : > { %v892_v37 = vsub.f32 %v890_v32, %v891_v35  ;;  %v898_v41 = vsub.f32 %v896_v38, %v897_v40 }
 0x1a8   : > { %755 = vmax.xlane.f32.xlu0 %v754_v9  ;;  %v881_v16 = vand.u32 4294901760, %v880_v15  ;;  %927 = vmatpush.xpose.msra.mxu2 %v884_v27  ;;  %v887_v34 = vand.u32 4294901760, %v886_v31  ;;  %v782_v15 = vld [vmem:[#allocation6 + $0x8] sm:$0xff]  ;;  %v796_v31 = vld [vmem:[#allocation4] sm:$0xff] }
 0x1a9   : > { %v893_v39 = vand.u32 4294901760, %v892_v37  ;;  %v899_v42 = vand.u32 4294901760, %v898_v41 }
 0x1aa   : > { %882 = vmatpush.xpose.msra.mxu1 %v881_v16  ;;  %962 = vmatpush.xpose.msra.mxu3 %v844_v30 }
 0x1ab   : > { %845 = vmatpush.xpose.msra.mxu0 %v844_v30 }
 0x1ac   : > { %930 = vmatpush.xpose.msra.mxu2 %v890_v32 }
 0x1ae   : > { %888 = vmatpush.xpose.msra.mxu1 %v887_v34  ;;  %964 = vmatpush.xpose.msra.mxu3 %v846_v36 }
 0x1af   : > { %847 = vmatpush.xpose.msra.mxu0 %v846_v36 }
 0x1b0   : > { %933 = vmatpush.xpose.msra.mxu2 %v896_v38 }
 0x1b2   : > { %1578 = vmatpush.xpose.msrb.mxu3 %v840_v12  ;;  %894 = vmatpush.xpose.msra.mxu1 %v893_v39 }
 0x1b3   : > { %993 = vmatpush.xpose.msrb.mxu0 %v879_v14 }
 0x1b4   : > { %1574 = vmatpush.xpose.msrb.mxu2 %v879_v14 }
 0x1b6   : > { %1579 = vmatpush.xpose.msrb.mxu3 %v842_v26  ;;  %900 = vmatpush.xpose.msra.mxu1 %v899_v42 }
 0x1b7   : > { %997 = vmatpush.xpose.msrb.mxu0 %v885_v29 }
 0x1b8   : > { %1575 = vmatpush.xpose.msrb.mxu2 %v885_v29 }
 0x1ba   : > { %1028 = vmatpush.xpose.msrb.mxu1 %v840_v12  ;;  %1580 = vmatpush.xpose.msrb.mxu3 %v844_v30 }
 0x1bb   : > { %1001 = vmatpush.xpose.msrb.mxu0 %v891_v35 }
 0x1bc   : > { %1576 = vmatpush.xpose.msrb.mxu2 %v891_v35 }
 0x1be   : > { %1030 = vmatpush.xpose.msrb.mxu1 %v842_v26  ;;  %1581 = vmatpush.xpose.msrb.mxu3 %v846_v36 }
 0x1bf   : > { %1005 = vmatpush.xpose.msrb.mxu0 %v897_v40 }
 0x1c0   : > { %1577 = vmatpush.xpose.msrb.mxu2 %v897_v40 }
 0x1c2   : > { %1032 = vmatpush.xpose.msrb.mxu1 %v844_v30 }
 0x1c6   : > { %1034 = vmatpush.xpose.msrb.mxu1 %v846_v36 }
 0x213   : > { %v753_v18 = vpop.xlane.xlu0 %752 }
 0x214   : > { %v2180_v19 = vmax.f32 %v2177_v17, %v753_v18 }
 0x216   : > { %v759_v20 = vsub.f32 %v2177_v17, %v2180_v19  ;;  %1048 = vst.msk [vmem:[#allocation5] sm:$0xff] %vm257_vm1, %v2180_v19  ;;  %767 = vperm.xlu1 %1696, %v2180_v19  }
 0x218   : > { %v761_v6 = vmul.f32 1.442695, %v759_v20 }
 0x21b   : > { %v756_v22 = vpop.xlane.xlu0 %755 }
 0x21c   : > { %v2190_v23 = vmax.f32 %v2187_v21, %v756_v22 }
 0x21e   : > { %v760_v24 = vsub.f32 %v2187_v21, %v2190_v23  ;;  %1049 = vst.msk [vmem:[#allocation5 + $0x8] sm:$0xff] %vm257_vm1, %v2190_v23  ;;  %772 = vperm.xlu1 %1696, %v2190_v23  }
 0x220   : > { %v763_v9 = vmul.f32 1.442695, %v760_v24 }
 0x288   : > { %v768_v43 = vpop.permute.xlu1 %767 }
 0x289   : > { %v775_v44 = vsub.f32 %v2165_v60, %v768_v43 }
 0x28b   : > { %v777_v45 = vmul.f32 1.442695, %v775_v44 }
 0x28d   : > { %1699 = vpow2.f32 %v777_v45 }
 0x290   : > { %v773_v46 = vpop.permute.xlu1 %772 }
 0x291   : > { %v776_v47 = vsub.f32 %v2167_v7, %v773_v46 }
 0x293   : > { %v1700_v48 = vpop.eup %1699  ;;  %v779_v49 = vmul.f32 1.442695, %v776_v47 }
 0x294   : > { %v785_v50 = vsel %vm750_vm2, %v1700_v48, 0.0  ;;  %v811_v51 = vsel %vm750_vm2, %v1700_v48, 0 }
 0x295   : > { %1701 = vpow2.f32 %v779_v49  ;;  %786 = vadd.xlane.f32.xlu2 %v785_v50  ;;  %v848_v52 = vand.u32 4294901760, %v811_v51 }
 0x296   : > { %1703 = vpow2.f32 %v761_v6 }
 0x297   : > { %902 = vmatmul.f32.vlgmr.msra.gmra.mxu1 %v848_v52  ;;  %v849_v53 = vsub.f32 %v811_v51, %v848_v52  ;;  %1705 = vpow2.f32 %v763_v9 }
 0x299   : > { %936 = vmatmul.f32.vlgmr.msra.gmra.mxu2 %v849_v53  ;;  %v850_v54 = vand.u32 4294901760, %v849_v53 }
 0x29b   : > { %v1702_v55 = vpop.eup %1701  ;;  %968 = vmatmul.f32.vlgmr.msra.gmra.mxu3 %v850_v54  ;;  %v851_v56 = vsub.f32 %v849_v53, %v850_v54 }
 0x29c   : > { %v788_v57 = vsel %vm750_vm2, %v1702_v55, 0.0  ;;  %v814_v58 = vsel %vm750_vm2, %v1702_v55, 0  ;;  %v1704_v8 = vpop.eup %1703  ;;  %v797_v55 = vld [vmem:[#allocation4 + $0x8] sm:$0xff] }
 0x29d   : > { %789 = vadd.xlane.f32.xlu2 %v788_v57  ;;  %v852_v59 = vand.u32 4294901760, %v851_v56  ;;  %v856_v61 = vand.u32 4294901760, %v814_v58  ;;  %v783_v11 = vmul.f32 %v1704_v8, %v781_v10  ;;  %v1706_v14 = vpop.eup %1705 }
 0x29e   : > { %v784_v16 = vmul.f32 %v1706_v14, %v782_v15 }
 0x29f   : > { %853 = vmatmul.f32.vlgmr.msra.gmra.mxu0 %v852_v59  ;;  %906 = vmatmul.f32.gmra.mxu1 %v856_v61  ;;  %v857_v62 = vsub.f32 %v814_v58, %v856_v61 }
 0x2a1   : > { %941 = vmatmul.f32.gmra.mxu2 %v857_v62  ;;  %v858_v63 = vand.u32 4294901760, %v857_v62 }
 0x2a3   : > { %974 = vmatmul.f32.gmra.mxu3 %v858_v63  ;;  %v859_v0 = vsub.f32 %v857_v62, %v858_v63 }
 0x2a5   : > { %v860_v1 = vand.u32 4294901760, %v859_v0 }
 0x2a7   : > { %861 = vmatmul.f32.gmra.mxu0 %v860_v1  ;;  %1036 = vmatmul.f32.vlgmr.msrb.gmra.mxu1 %v848_v52 }
 0x2a9   : > { %1011 = vmatmul.f32.vlgmr.msrb.gmra.mxu2 %v856_v61 }
 0x2ab   : > { %1040 = vmatmul.f32.vlgmr.msrb.gmra.mxu3 %v856_v61 }
 0x2af   : > { %1007 = vmatmul.f32.vlgmr.msrb.gmra.mxu0 %v848_v52 }
 0x2b5   : > { %800 = vperm.xlu2 %1698, %v1704_v8  }
 0x308   : > { %v787_v12 = vpop.xlane.xlu2 %786 }
 0x309   : > { %v791_v13 = vadd.f32 %v787_v12, %v783_v11 }
 0x30b   : > { %794 = vst.msk [vmem:[#allocation6] sm:$0xff] %vm257_vm1, %v791_v13 }
 0x310   : > { %v790_v17 = vpop.xlane.xlu2 %789 }
 0x311   : > { %v792_v18 = vadd.f32 %v790_v17, %v784_v16 }
 0x312   : > { %v1055_v19 = vld [vmem:[#allocation6] sm:$0xff] }
 0x313   : > { %795 = vst.msk [vmem:[#allocation6 + $0x8] sm:$0xff] %vm257_vm1, %v792_v18  ;;  %1059 = vperm.xlu0 %1697, %v1055_v19  }
 0x314   : > { %v903_v20 = vpop.f32.mrf.mxu1 }
 0x318   : > { %v801_v32 = vpop.permute.xlu2 %800 }
 0x319   : > { %v808_v36 = vmul.f32 %v801_v32, %v796_v31 }
 0x31a   : > { %v1056_v22 = vld [vmem:[#allocation6 + $0x8] sm:$0xff] }
 0x31b   : > { %1064 = vperm.xlu1 %1696, %v1056_v22  }
 0x31c   : > { %v854_v21 = vpop.f32.mrf.mxu0  ;;  %v907_v24 = vpop.f32.mrf.mxu1 }
 0x31d   : > { %v904_v23 = vadd.f32 %v903_v20, %v854_v21  ;;  %v937_v27 = vpop.f32.mrf.mxu2 }
 0x31e   : > { %v969_v29 = vpop.f32.mrf.mxu3 }
 0x31f   : > { %v938_v28 = vadd.f32 %v937_v27, %v904_v23 }
 0x321   : > { %v970_v30 = vadd.f32 %v969_v29, %v938_v28 }
 0x323   : > { %805 = vperm.xlu1 %1696, %v1706_v14  }
 0x324   : > { %v862_v25 = vpop.f32.mrf.mxu0  ;;  %v1037_v35 = vpop.f32.mrf.mxu1 }
 0x325   : > { %v908_v26 = vadd.f32 %v907_v24, %v862_v25  ;;  %v942_v39 = vpop.f32.mrf.mxu2 }
 0x326   : > { %v975_v41 = vpop.f32.mrf.mxu3 }
 0x327   : > { %v943_v43 = vadd.f32 %v942_v39, %v908_v26 }
 0x329   : > { %v976_v48 = vadd.f32 %v975_v41, %v943_v43 }
 0x32c   : > { %v1008_v33 = vpop.f32.mrf.mxu0 }
 0x32d   : > { %v1009_v34 = vadd.f32 %v1008_v33, %v970_v30  ;;  %v1012_v46 = vpop.f32.mrf.mxu2 }
 0x32e   : > { %v1013_v52 = vadd.f32 %v1012_v46, %v976_v48  ;;  %v1041_v53 = vpop.f32.mrf.mxu3 }
 0x32f   : > { %v1038_v37 = vadd.f32 %v1037_v35, %v1009_v34 }
 0x330   : > { %v1042_v62 = vadd.f32 %v1041_v53, %v1013_v52 }
 0x331   : > { %v1044_v38 = vadd.f32 %v1038_v37, %v808_v36 }
 0x333   : > { %1046 = vst.msk [vmem:[#allocation4] sm:$0xff] %vm254_vm0, %v1044_v38 }
 0x33a   : > { %v1053_v63 = vld [vmem:[#allocation4] sm:$0xff] }
 0x385   : > { %v1060_v40 = vpop.permute.xlu0 %1059 }
 0x386   : > { %1707 = vrcp.f32 %v1060_v40  ;;  %v1078_v49 = vand.u32 2147483648, %v1060_v40  ;;  %v1076_v51 = vand.u32 2147483647, %v1060_v40  ;;  %vm1072_vm4 = vweird.f32 %v1060_v40 }
 0x388   : > { %v1079_v57 = vor.u32 1.1754944e-38, %v1078_v49  ;;  %vm1077_vm6 = vcmp.eq.f32.partialorder %v1076_v51, 8.507059e+37 }
 0x38c   : > { %v1708_v42 = vpop.eup %1707 }
 0x38d   : > { %v1068_v44 = vmul.f32 %v1708_v42, %v1060_v40  ;;  %v1065_v45 = vpop.permute.xlu1 %1064  ;;  %vm1073_vm3 = vweird.f32 %v1708_v42 }
 0x38e   : > { %1709 = vrcp.f32 %v1065_v45  ;;  %vm1074_vm5 = vmor %vm1072_vm4, %vm1073_vm3  ;;  %v1093_v12 = vand.u32 2147483648, %v1065_v45  ;;  %vm1087_vm8 = vweird.f32 %v1065_v45  ;;  %v1091_v13 = vand.u32 2147483647, %v1065_v45 }
 0x38f   : > { %v1069_v47 = vsub.f32 1.0, %v1068_v44 }
 0x390   : > { %v1094_v15 = vor.u32 1.1754944e-38, %v1093_v12  ;;  %vm1092_vm10 = vcmp.eq.f32.partialorder %v1091_v13, 8.507059e+37 }
 0x391   : > { %v1070_v50 = vmul.f32 %v1708_v42, %v1069_v47 }
 0x393   : > { %v1071_v54 = vadd.f32 %v1708_v42, %v1070_v50 }
 0x394   : > { %v1710_v56 = vpop.eup %1709 }
 0x395   : > { %v1075_v58 = vsel %vm1074_vm5, %v1708_v42, %v1071_v54  ;;  %v1083_v59 = vmul.f32 %v1710_v56, %v1065_v45  ;;  %v806_v61 = vpop.permute.xlu1 %805  ;;  %vm1088_vm7 = vweird.f32 %v1710_v56 }
 0x396   : > { %v1080_v0 = vsel %vm1077_vm6, %v1079_v57, %v1075_v58  ;;  %v809_v1 = vmul.f32 %v806_v61, %v797_v55  ;;  %vm1089_vm9 = vmor %vm1087_vm8, %vm1088_vm7 }
 0x397   : > { %v1081_v6 = vmul.f32 %v1080_v0, %v1053_v63  ;;  %v1084_v8 = vsub.f32 1.0, %v1083_v59 }
 0x398   : > { %v1045_v9 = vadd.f32 %v1042_v62, %v809_v1 }
 0x399   : > { %1097 = vst.msk [vmem:[#allocation3] sm:$0xff] %vm254_vm0, %v1081_v6  ;;  %v1085_v10 = vmul.f32 %v1710_v56, %v1084_v8 }
 0x39a   : > { %1047 = vst.msk [vmem:[#allocation4 + $0x8] sm:$0xff] %vm254_vm0, %v1045_v9 }
 0x39b   : > { %v1086_v11 = vadd.f32 %v1710_v56, %v1085_v10 }
 0x39d   : > { %v1090_v14 = vsel %vm1089_vm9, %v1710_v56, %v1086_v11 }
 0x39e   : > { %v1095_v16 = vsel %vm1092_vm10, %v1094_v15, %v1090_v14 }
 0x3a0   : > { %1102 = sbr.rel (%p1548_p7) target bundleno = 935 (0x3a7), region = 68 }
 0x3a1   : > { %v1054_v17 = vld [vmem:[#allocation4 + $0x8] sm:$0xff] }
 0x3a2   : > { %v1096_v18 = vmul.f32 %v1095_v16, %v1054_v17 }
 0x3a4   : > { %1098 = vst.msk [vmem:[#allocation3 + $0x8] sm:$0xff] %vm254_vm0, %v1096_v18 }
 0x3a5   : > { %1103 = vst.msk [vmem:[%s2089_s17] sm:$0xff] %vm254_vm0, %v1081_v6 }
 0x3a6   : > { %1104 = vst.msk [vmem:[%s2089_s17 + $0x8] sm:$0xff] %vm254_vm0, %v1096_v18 }
 0x3a7 PF: > { %1108 = sbr.rel (%p1544_p3) target bundleno = 1174 (0x496), region = 72  ;;  %p1550_p10 = scmp.ne.s32.totalorder (!%p1544_p3), %s1893_s15, 2 }
 0x3ac   : > { %vm1109_vm11 = vcmask 523264  }
 0x3ad   : > { %v1168_v19 = vsel %vm1109_vm11, %v2087_v5, 0  ;;  %v1165_v20 = vsel %vm1109_vm11, %v2085_v4, 0  ;;  %v1162_v22 = vsel %vm1109_vm11, %v2083_v3, 0  ;;  %v1110_v25 = vsel %vm1109_vm11, %v2165_v60, -inf }
 0x3ae   : > { %v2234_v21 = vand.u32 4294901760, %v1168_v19  ;;  %v2236_v23 = vand.u32 4294901760, %v1165_v20  ;;  %v2238_v24 = vand.u32 4294901760, %v1162_v22  ;;  %v1111_v26 = vsel %vm1109_vm11, %v2167_v7, -inf }
 0x3af   : > { %v1112_v27 = vmax.f32 %v1110_v25, %v1111_v26  ;;  %v1159_v30 = vsel %vm1109_vm11, %v2081_v2, 0 }
 0x3b0   : > { %v1220_v5 = vsub.f32 %v1168_v19, %v2234_v21  ;;  %1300 = vmatpush.xpose.msra.mxu3 %v2234_v21  ;;  %v1226_v4 = vsub.f32 %v1165_v20, %v2236_v23  ;;  %1183 = vmatpush.xpose.msra.mxu0 %v2234_v21  ;;  %v1232_v3 = vsub.f32 %v1162_v22, %v2238_v24  ;;  %v1188_v37 = vand.u32 4294901760, %v1159_v30 }
 0x3b1   : > { %v1113_v31 = vrot.slane %v1112_v27, 4 }
 0x3b2   : > { %1266 = vmatpush.xpose.msra.mxu2 %v1220_v5  ;;  %v1221_v28 = vand.u32 4294901760, %v1220_v5  ;;  %v1227_v29 = vand.u32 4294901760, %v1226_v4  ;;  %v1233_v34 = vand.u32 4294901760, %v1232_v3  ;;  %v1238_v41 = vsub.f32 %v1159_v30, %v1188_v37 }
 0x3b3   : > { %v1114_v35 = vmax.f32 %v1112_v27, %v1113_v31 }
 0x3b4   : > { %v1222_v32 = vsub.f32 %v1220_v5, %v1221_v28  ;;  %1302 = vmatpush.xpose.msra.mxu3 %v2236_v23  ;;  %1185 = vmatpush.xpose.msra.mxu0 %v2236_v23  ;;  %v1228_v33 = vsub.f32 %v1226_v4, %v1227_v29  ;;  %v1234_v40 = vsub.f32 %v1232_v3, %v1233_v34  ;;  %v1239_v53 = vand.u32 4294901760, %v1238_v41 }
 0x3b5   : > { %v1115_v38 = vrot.slane %v1114_v35, 2 }
 0x3b6   : > { %1269 = vmatpush.xpose.msra.mxu2 %v1226_v4  ;;  %v1223_v36 = vand.u32 4294901760, %v1222_v32  ;;  %v1229_v39 = vand.u32 4294901760, %v1228_v33  ;;  %v1235_v43 = vand.u32 4294901760, %v1234_v40  ;;  %v1240_v55 = vsub.f32 %v1238_v41, %v1239_v53 }
 0x3b7   : > { %v1116_v2 = vmax.f32 %v1114_v35, %v1115_v38 }
 0x3b8   : > { %1224 = vmatpush.xpose.msra.mxu1 %v1223_v36  ;;  %1304 = vmatpush.xpose.msra.mxu3 %v2238_v24  ;;  %v1241_v57 = vand.u32 4294901760, %v1240_v55 }
 0x3b9   : > { %1187 = vmatpush.xpose.msra.mxu0 %v2238_v24  ;;  %v1117_v42 = vrot.slane %v1116_v2, 1 }
 0x3ba   : > { %1272 = vmatpush.xpose.msra.mxu2 %v1232_v3 }
 0x3bb   : > { %v1118_v44 = vmax.f32 %v1116_v2, %v1117_v42  ;;  %v1150_v42 = vld [vmem:[#allocation4] sm:$0xff] }
 0x3bc   : > { %1230 = vmatpush.xpose.msra.mxu1 %v1229_v39  ;;  %1306 = vmatpush.xpose.msra.mxu3 %v1188_v37 }
 0x3bd   : > { %1189 = vmatpush.xpose.msra.mxu0 %v1188_v37  ;;  %v1119_v45 = vsub.f32 %v2165_v60, %v1118_v44  ;;  %v1120_v46 = vsub.f32 %v2167_v7, %v1118_v44 }
 0x3be   : > { %1275 = vmatpush.xpose.msra.mxu2 %v1238_v41 }
 0x3bf   : > { %v1121_v47 = vmul.f32 1.442695, %v1119_v45  ;;  %v1123_v48 = vmul.f32 1.442695, %v1120_v46 }
 0x3c0   : > { %1586 = vmatpush.xpose.msrb.mxu3 %v2234_v21  ;;  %1236 = vmatpush.xpose.msra.mxu1 %v1235_v43  ;;  %v1151_v43 = vld [vmem:[#allocation4 + $0x8] sm:$0xff] }
 0x3c1   : > { %1335 = vmatpush.xpose.msrb.mxu0 %v1221_v28  ;;  %1711 = vpow2.f32 %v1121_v47 }
 0x3c2   : > { %1582 = vmatpush.xpose.msrb.mxu2 %v1221_v28  ;;  %1713 = vpow2.f32 %v1123_v48 }
 0x3c4   : > { %1587 = vmatpush.xpose.msrb.mxu3 %v2236_v23  ;;  %1242 = vmatpush.xpose.msra.mxu1 %v1241_v57 }
 0x3c5   : > { %1339 = vmatpush.xpose.msrb.mxu0 %v1227_v29 }
 0x3c6   : > { %1583 = vmatpush.xpose.msrb.mxu2 %v1227_v29 }
 0x3c7   : > { %v1712_v49 = vpop.eup %1711 }
 0x3c8   : > { %1588 = vmatpush.xpose.msrb.mxu3 %v2238_v24  ;;  %v1714_v50 = vpop.eup %1713  ;;  %v1125_v60 = vsel %vm1109_vm11, %v1712_v49, 0.0  ;;  %1370 = vmatpush.xpose.msrb.mxu1 %v2234_v21 }
 0x3c9   : > { %1343 = vmatpush.xpose.msrb.mxu0 %v1233_v34  ;;  %v1126_v7 = vsel %vm1109_vm11, %v1714_v50, 0.0 }
 0x3ca   : > { %1584 = vmatpush.xpose.msrb.mxu2 %v1233_v34  ;;  %v1127_v51 = vadd.f32 %v1126_v7, %v1125_v60 }
 0x3cc   : > { %1589 = vmatpush.xpose.msrb.mxu3 %v1188_v37  ;;  %v1128_v52 = vrot.slane %v1127_v51, 4  ;;  %1372 = vmatpush.xpose.msrb.mxu1 %v2236_v23 }
 0x3cd   : > { %1347 = vmatpush.xpose.msrb.mxu0 %v1239_v53 }
 0x3ce   : > { %v1129_v54 = vadd.f32 %v1128_v52, %v1127_v51  ;;  %1585 = vmatpush.xpose.msrb.mxu2 %v1239_v53 }
 0x3d0   : > { %v1130_v56 = vrot.slane %v1129_v54, 2  ;;  %1374 = vmatpush.xpose.msrb.mxu1 %v2238_v24 }
 0x3d2   : > { %v1131_v58 = vadd.f32 %v1130_v56, %v1129_v54 }
 0x3d4   : > { %v1132_v59 = vrot.slane %v1131_v58, 1  ;;  %1376 = vmatpush.xpose.msrb.mxu1 %v1188_v37 }
 0x3d6   : > { %v1133_v61 = vadd.f32 %v1132_v59, %v1131_v58 }
 0x3d8   : > { %1715 = vrcp.f32 %v1133_v61  ;;  %v1145_v0 = vand.u32 2147483648, %v1133_v61  ;;  %vm1139_vm12 = vweird.f32 %v1133_v61  ;;  %v1143_v6 = vand.u32 2147483647, %v1133_v61 }
 0x3da   : > { %v1146_v9 = vor.u32 1.1754944e-38, %v1145_v0  ;;  %vm1144_vm15 = vcmp.eq.f32.partialorder %v1143_v6, 8.507059e+37 }
 0x3de   : > { %v1716_v62 = vpop.eup %1715 }
 0x3df   : > { %v1135_v63 = vmul.f32 %v1716_v62, %v1133_v61  ;;  %vm1140_vm13 = vweird.f32 %v1716_v62 }
 0x3e0   : > { %vm1141_vm14 = vmor %vm1139_vm12, %vm1140_vm13 }
 0x3e1   : > { %v1136_v1 = vsub.f32 1.0, %v1135_v63 }
 0x3e3   : > { %v1137_v8 = vmul.f32 %v1716_v62, %v1136_v1 }
 0x3e5   : > { %v1138_v10 = vadd.f32 %v1716_v62, %v1137_v8 }
 0x3e7   : > { %v1142_v11 = vsel %vm1141_vm14, %v1716_v62, %v1138_v10 }
 0x3e8   : > { %v1147_v12 = vsel %vm1144_vm15, %v1146_v9, %v1142_v11 }
 0x3e9   : > { %v1148_v13 = vmul.f32 %v1712_v49, %v1147_v12  ;;  %v1149_v14 = vmul.f32 %v1714_v50, %v1147_v12 }
 0x3eb   : > { %v1153_v15 = vsel %vm1109_vm11, %v1148_v13, 0  ;;  %v1156_v16 = vsel %vm1109_vm11, %v1149_v14, 0 }
 0x3ec   : > { %v1190_v17 = vand.u32 4294901760, %v1153_v15  ;;  %v1198_v18 = vand.u32 4294901760, %v1156_v16 }
 0x3ee   : > { %v1191_v19 = vsub.f32 %v1153_v15, %v1190_v17  ;;  %1244 = vmatmul.f32.vlgmr.msra.gmra.mxu1 %v1190_v17  ;;  %v1199_v20 = vsub.f32 %v1156_v16, %v1198_v18 }
 0x3f0   : > { %1278 = vmatmul.f32.vlgmr.msra.gmra.mxu2 %v1191_v19  ;;  %v1192_v22 = vand.u32 4294901760, %v1191_v19  ;;  %v1200_v23 = vand.u32 4294901760, %v1199_v20 }
 0x3f2   : > { %1310 = vmatmul.f32.vlgmr.msra.gmra.mxu3 %v1192_v22  ;;  %v1193_v21 = vsub.f32 %v1191_v19, %v1192_v22  ;;  %v1201_v25 = vsub.f32 %v1199_v20, %v1200_v23 }
 0x3f4   : > { %v1194_v24 = vand.u32 4294901760, %v1193_v21  ;;  %v1202_v26 = vand.u32 4294901760, %v1201_v25 }
 0x3f6   : > { %1195 = vmatmul.f32.vlgmr.msra.gmra.mxu0 %v1194_v24  ;;  %1248 = vmatmul.f32.gmra.mxu1 %v1198_v18 }
 0x3f8   : > { %1283 = vmatmul.f32.gmra.mxu2 %v1199_v20 }
 0x3fa   : > { %1316 = vmatmul.f32.gmra.mxu3 %v1200_v23 }
 0x3fe   : > { %1203 = vmatmul.f32.gmra.mxu0 %v1202_v26  ;;  %1378 = vmatmul.f32.vlgmr.msrb.gmra.mxu1 %v1190_v17 }
 0x400   : > { %1353 = vmatmul.f32.vlgmr.msrb.gmra.mxu2 %v1198_v18 }
 0x402   : > { %1382 = vmatmul.f32.vlgmr.msrb.gmra.mxu3 %v1198_v18 }
 0x406   : > { %1349 = vmatmul.f32.vlgmr.msrb.gmra.mxu0 %v1190_v17 }
 0x46b   : > { %v1245_v5 = vpop.f32.mrf.mxu1 }
 0x473   : > { %v1196_v4 = vpop.f32.mrf.mxu0  ;;  %v1279_v3 = vpop.f32.mrf.mxu2 }
 0x474   : > { %v1249_v28 = vpop.f32.mrf.mxu1  ;;  %v1246_v29 = vadd.f32 %v1245_v5, %v1196_v4 }
 0x475   : > { %v1311_v27 = vpop.f32.mrf.mxu3 }
 0x476   : > { %v1280_v34 = vadd.f32 %v1279_v3, %v1246_v29 }
 0x478   : > { %v1312_v36 = vadd.f32 %v1311_v27, %v1280_v34 }
 0x47b   : > { %v1204_v30 = vpop.f32.mrf.mxu0  ;;  %v1284_v31 = vpop.f32.mrf.mxu2 }
 0x47c   : > { %v1250_v32 = vadd.f32 %v1249_v28, %v1204_v30  ;;  %v1379_v38 = vpop.f32.mrf.mxu1 }
 0x47d   : > { %v1317_v33 = vpop.f32.mrf.mxu3 }
 0x47e   : > { %v1285_v35 = vadd.f32 %v1284_v31, %v1250_v32 }
 0x480   : > { %v1318_v37 = vadd.f32 %v1317_v33, %v1285_v35 }
 0x483   : > { %v1350_v39 = vpop.f32.mrf.mxu0  ;;  %v1354_v40 = vpop.f32.mrf.mxu2 }
 0x484   : > { %v1351_v2 = vadd.f32 %v1350_v39, %v1312_v36  ;;  %v1355_v41 = vadd.f32 %v1354_v40, %v1318_v37 }
 0x485   : > { %v1383_v44 = vpop.f32.mrf.mxu3 }
 0x486   : > { %v1380_v45 = vadd.f32 %v1379_v38, %v1351_v2  ;;  %v1384_v46 = vadd.f32 %v1383_v44, %v1355_v41 }
 0x488   : > { %v1386_v47 = vadd.f32 %v1380_v45, %v1150_v42  ;;  %v1387_v48 = vadd.f32 %v1384_v46, %v1151_v43 }
 0x48a   : > { %1388 = vst.msk [vmem:[#allocation4] sm:$0xff] %vm254_vm0, %v1386_v47 }
 0x48b   : > { %1389 = vst.msk [vmem:[#allocation4 + $0x8] sm:$0xff] %vm254_vm0, %v1387_v48 }
 0x48f   : > { %1400 = sbr.rel (%p1550_p10) target bundleno = 1174 (0x496), region = 80 }
 0x491   : > { %v1393_v49 = vld [vmem:[#allocation4] sm:$0xff] }
 0x492   : > { %1395 = vst.msk [vmem:[#allocation3] sm:$0xff] %vm254_vm0, %v1393_v49  ;;  %v1394_v50 = vld [vmem:[#allocation4 + $0x8] sm:$0xff] }
 0x493   : > { %1396 = vst.msk [vmem:[#allocation3 + $0x8] sm:$0xff] %vm254_vm0, %v1394_v50 }
 0x494   : > { %1401 = vst.msk [vmem:[%s2089_s17] sm:$0xff] %vm254_vm0, %v1393_v49 }
 0x495   : > { %1402 = vst.msk [vmem:[%s2089_s17 + $0x8] sm:$0xff] %vm254_vm0, %v1394_v50 }
 0x496 PF: > { %s1557_s8 = sshll.u32 %s1897_s16, 4  ;;  %s1416_s4 = sshll.u32 %s2089_s17, 4  ;;  %s1417_s4 = int_to_ptr.vmem [resolvable:$true] %s1416_s4 }
 0x497   : > { %s1415_s20 = scalar_lea.hbm %s2323_s3, %s1557_s8  ;;  %s1404_s5 = scalar_lea.sflag [#allocation9], %s2062_s29 }
 0x498   : > { %s1418_s15 = sshll.u32 %s1415_s20, 4  ;;  %s1827_s16 = scalar_lea.hbm %s2323_s3, 32  ;;  %s1419_s15 = int_to_ptr.hbm [resolvable:$true] %s1418_s15 }
 0x499   : > { %s1821_s6 = sshra.s32 %s1419_s15, 4  ;;  %s1822_s6 = int_to_ptr.hbm [resolvable:$true] %s1821_s6 }
 0x49a   : > { %s1823_s9 = scalar_lea.hbm %s1822_s6, 16  ;;  %p1828_p2 = scmp.lt.s32.totalorder %s1822_s6, %s2323_s3 }
 0x49b   : > { %p1824_p11 = scmp.ne.s32.totalorder %s1822_s6, %s1823_s9  ;;  %p1829_p4 = scmp.lt.s32.totalorder %s1827_s16, %s1823_s9 }
 0x49d   : > { %p1825_p12 = pnand %p1824_p11, %p2033_p0  ;;  %p1830_p6 = por %p1829_p4, %p1828_p2 }
 0x49f   : > { %p1826_p13 = pneg %p1825_p12 }
 0x4a1   : > { %p1831_p8 = pnand %p1830_p6, %p1826_p13 }
 0x4a3   : > { %1834 = shalt.err (!%p1831_p8)
}
 0x4a4   : > { %s1918_s29 = smov 128   ;;  %s1919_s2 = smov 8  }
 0x4a5   : > { %1600 = dma.vmem_to_hbm [thread:$0]  (%p2033_p0), %s1417_s4, 256, %s1419_s15, %s1404_s5, %s1918_s29, %s1918_s29, %s1919_s2  }
 0x4a6 PF: > { %p1622_p9 = scmp.ge.s32.totalorder %s1909_s19, 2  ;;  %s1433_s17 = sand.u32 1, %s1881_s12  }
 0x4a7   : > { %s1434_s22 = scalar_lea.sflag [#allocation9], %s1433_s17 }
 0x4a8   : > { %p1614_p1 = pnand %p1622_p9, %p1997_p5 }
 0x4aa   : > { %p1615_p3 = pneg %p1614_p1 }
 0x4ac   : > { %1876 = dma.done.wait (%p1615_p3), %s1434_s22, 256  }
 0x4ad   : > { %1878 = vsyncadd (%p1615_p3), %s1434_s22, 4294967040  ;;  %s20_s19 = sadd.s32 1, %s1909_s19   ;;  %s2341_s15 = sld [smem:[#allocation17_spill]] }
 0x4ae   : > { %p17_p7 = scmp.ge.s32.totalorder %s20_s19, 8   ;;  %s2342_s17 = sld [smem:[#allocation18_spill]] }
 0x4af   : > { %s2343_s12 = smov %s1885_s13  ;;  %s2344_s13 = smov %s1889_s14 }
 0x4b0   : > { %s2345_s14 = smov %s2052_s1  ;;  %s2346_s16 = smov %s1905_s18 }
 0x4b1   : > { %s2347_s18 = smov %s2353_s21  ;;  %19 = sbr.rel (!%p17_p7) target bundleno = 11 (0xb), region = 122 }
 0x4b6   :  { %1440 = vsyncpa [#allocation8], 1 }
 0x4b7   :  { %1442 = vsyncpa [#allocation8 + $0x1], 1 }
 0x4b8   :  { %1443 = vsyncpa [#allocation11], 1 }
 0x4b9   :  { %1444 = vsyncpa [#allocation9], 1 }
 0x4ba   :  { %1446 = vsyncpa [#allocation9 + $0x1], 1 }

</bundles_post_ra>
